<compile_context>
chip_gen: v6e
topology: v6e:2x2x1
jax: 0.10.0
libtpu: 0.0.40
codegen_flags: <defaults>
</compile_context>

<pallas_src>
import jax
import jax.numpy as jnp
from jax.experimental import pallas as pl
from jax.experimental.pallas import tpu as pltpu

_EPS = 1e-5                    # PyTorch BatchNorm2d default eps

# MXU input dtype for the pointwise matmul.  f32 keeps numerics aligned with
# the f32 PyTorch reference; flip to jnp.bfloat16 on v6e/v7x for ~2x MXU
# throughput and half the pointwise-weight DMA (validate with the tolerance
# check in __main__).
MATMUL_DTYPE = jnp.float32


# ---------------------------------------------------------------------------
# Fused separable-unit kernel
# ---------------------------------------------------------------------------
def _make_sep_unit_kernel(*, stride, dilation, apply_relu, skip_mode,
                          n_halo, skip_stride, mm_dtype):
    """skip_mode in {"none", "identity", "proj"}."""

    def kernel(*refs):
        x_ref = refs[0]
        halo_refs = refs[1:1 + n_halo]
        dw_ref, pw_ref, b_ref = refs[1 + n_halo:4 + n_halo]
        idx = 4 + n_halo
        skip_ref = sin_ref = None
        if skip_mode == "identity":
            skip_ref = refs[idx]; idx += 1
        elif skip_mode == "proj":
            sin_ref = refs[idx]; idx += 1
        o_ref = refs[idx]
        acc_ref = refs[idx + 1]

        _, tho, wo, tcout = o_ref.shape
        cin = x_ref.shape[-1]
        j = pl.program_id(2)

        # Depthwise 3x3 (BN1 folded into dw) -- computed once per (n, h) tile
        # at the first Cout step into the persistent VMEM scratch and reused
        # for every Cout tile.  The tile is small (tho rows), so the unrolled
        # 9-tap loop keeps only tile-sized f32 temporaries live.
        @pl.when(j == 0)
        def _():
            x = x_ref[0]                              # (tho*stride, Wp, Cin)
            if n_halo:
                x = jnp.concatenate([x] + [h[0] for h in halo_refs], axis=0)
            x = x.astype(jnp.float32)
            if apply_relu:
                # ReLU(0) == 0, so ReLU after zero padding == before it.
                x = jnp.maximum(x, 0.0)
            dw = dw_ref[...].astype(jnp.float32)      # (3, 3, Cin)
            acc = jnp.zeros((tho, wo, cin), jnp.float32)
            for di in range(3):
                for dj in range(3):
                    r0 = di * dilation
                    c0 = dj * dilation
                    if stride == 1:
                        xs = x[r0:r0 + tho, c0:c0 + wo, :]
                    else:
                        # Stride folded into the taps: only kept positions are
                        # computed.  Strided slicing on a *value* (lax.slice),
                        # never on the Ref.
                        xs = x[r0:r0 + (tho - 1) * stride + 1:stride,
                               c0:c0 + (wo - 1) * stride + 1:stride, :]
                    # TODO(synk): the W-axis shifts could use pltpu.roll (XLU)
                    # instead of sublane-shifted slices.
                    acc = acc + xs * dw[di, dj, :]
            if skip_mode == "proj":
                acc_ref[:, :cin] = acc.reshape(tho * wo, cin)
                # Skip input subsampled in-kernel and written into the tail K
                # columns -> the projection rides the same MXU matmul below.
                s = sin_ref[0]
                if skip_stride > 1:
                    s = s[::skip_stride, ::skip_stride, :]
                cs = s.shape[-1]
                acc_ref[:, cin:] = s.reshape(tho * wo, cs).astype(jnp.float32)
            else:
                acc_ref[...] = acc.reshape(tho * wo, cin)

        # Pointwise 1x1 conv (+ fused skip projection) for this Cout tile.
        y = jnp.dot(acc_ref[...].astype(mm_dtype), pw_ref[...],
                    preferred_element_type=jnp.float32)
        y = y + b_ref[...].astype(jnp.float32)   # folded BN1+BN2 (+ skip BN)

        if skip_mode == "identity":
            y = y + skip_ref[0].reshape(tho * wo, tcout).astype(jnp.float32)

        o_ref[...] = y.reshape(1, tho, wo, tcout).astype(o_ref.dtype)

    return kernel


def _pick_h_tile(ho):
    """Output-row tile: bounds VMEM and exposes a parallel spatial grid axis."""
    if ho <= 8:
        return ho
    for t in (8, 4, 2):
        if ho % t == 0:
            return t
    return ho                     # odd heights: single spatial tile


def _pick_cout_tile(cout):
    """Return (tile, padded_cout).  Lane-aligned 128-multiple tiles when possible."""
    for t in (512, 256, 128):
        if cout % t == 0:
            return t, cout
    if cout <= 256:
        return cout, cout         # small channel counts: single full-dim tile
    cpad = ((cout + 127) // 128) * 128       # e.g. 728 -> 768
    for t in (256, 128):
        if cpad % t == 0:
            return t, cpad
    return cpad, cpad


# ---------------------------------------------------------------------------
# pallas_call wrapper for one separable unit (optionally with fused skip)
# ---------------------------------------------------------------------------
def sep_conv_unit(x, dw, pw, bias, *, stride, dilation, apply_relu,
                  skip_add=None, skip_proj=None):
    """x: (N, H, W, Cin) NHWC.  Returns (N, Ho, Wo, Cout).

    skip_add : (N, Ho, Wo, Cout) identity residual, added in-kernel.
    skip_proj: (inp, w_skip, skip_stride); the 1x1-projected residual is
               computed in-kernel, fused into the pointwise matmul via K
               concatenation (its BN bias must already be folded into `bias`).
    """
    assert skip_add is None or skip_proj is None
    N, H, W, cin = x.shape
    cout = pw.shape[1]
    pad = dilation                 # fixed_padding for k=3: dilation each side
    Ho = (H - 1) // stride + 1
    Wo = (W - 1) // stride + 1

    tho = _pick_h_tile(Ho)
    nH = Ho // tho
    th_in = tho * stride
    n_halo = 2 * dilation + 1 - stride          # extra window rows per tile
    tcout, cpad = _pick_cout_tile(cout)
    n_ct = cpad // tcout

    # TODO(synk): the fixed_padding copy still round-trips HBM once per unit;
    # it could be removed by masking edge taps inside the kernel.
    xp = jnp.pad(x, ((0, 0), (pad, pad), (pad, pad), (0, 0)))
    Hp, Wp = H + 2 * pad, W + 2 * pad

    skip_mode = "none"
    skip_stride = 1
    sin = None
    cs = 0
    w_all = pw
    if skip_add is not None:
        skip_mode = "identity"
    elif skip_proj is not None:
        skip_mode = "proj"
        sin, w_skip, skip_stride = skip_proj
        cs = sin.shape[-1]
        w_all = jnp.concatenate([pw, w_skip], axis=0)       # (Cin + Cs, Cout)
        need = nH * tho * skip_stride
        if need > sin.shape[1]:    # keep the last tile's block in-bounds
            sin = jnp.pad(sin, ((0, 0), (0, need - sin.shape[1]), (0, 0), (0, 0)))

    if cpad != cout:               # lane-align Cout (e.g. 728 -> 768), crop later
        w_all = jnp.pad(w_all, ((0, 0), (0, cpad - cout)))
        bias = jnp.pad(bias, ((0, 0), (0, cpad - cout)))
        if skip_add is not None:
            skip_add = jnp.pad(skip_add,
                               ((0, 0), (0, 0), (0, 0), (0, cpad - cout)))
    ktot = w_all.shape[0]
    w_all = w_all.astype(MATMUL_DTYPE)

    # BlockSpecs: main row tile + single-row halo blocks of the same array
    # (blocked indexing with size-1 rows -> arbitrary element offsets, no
    # divisibility constraints).
    in_specs = [pl.BlockSpec((1, th_in, Wp, cin), lambda n, h, j: (n, h, 0, 0))]
    args = [xp]
    for r in range(n_halo):
        in_specs.append(pl.BlockSpec(
            (1, 1, Wp, cin),
            lambda n, h, j, r=r: (n, (h + 1) * th_in + r, 0, 0)))
        args.append(xp)
    in_specs += [
        pl.BlockSpec((3, 3, cin), lambda n, h, j: (0, 0, 0)),
        pl.BlockSpec((ktot, tcout), lambda n, h, j: (0, j)),
        pl.BlockSpec((1, tcout), lambda n, h, j: (0, j)),
    ]
    args += [dw, w_all, bias]

    itemsize = jnp.dtype(x.dtype).itemsize
    blk_skip = 0
    if skip_mode == "identity":
        in_specs.append(pl.BlockSpec((1, tho, Wo, tcout),
                                     lambda n, h, j: (n, h, 0, j)))
        args.append(skip_add)
        blk_skip = tho * Wo * tcout * itemsize
    elif skip_mode == "proj":
        W0 = sin.shape[2]
        in_specs.append(pl.BlockSpec((1, tho * skip_stride, W0, cs),
                                     lambda n, h, j: (n, h, 0, 0)))
        args.append(sin)
        blk_skip = tho * skip_stride * W0 * cs * itemsize

    # VMEM budget: double-buffered blocks (counted once here, x2 below) +
    # the persistent f32 scratch.  Cap at 48 MiB so v7x (64 MiB physical)
    # keeps compiler headroom; with row tiling this never binds on v5e/v6e.
    w_item = jnp.dtype(w_all.dtype).itemsize
    blk_in = (th_in + n_halo) * Wp * cin * itemsize
    blk_out = tho * Wo * tcout * itemsize
    blk_wgt = 9 * cin * 4 + ktot * tcout * w_item + tcout * 4
    est = 2 * (blk_in + blk_out + blk_wgt + blk_skip) + tho * Wo * ktot * 4
    vmem_limit = int(min(max(est * 5 // 4, 32 * 1024 * 1024), 48 * 1024 * 1024))

    kernel = _make_sep_unit_kernel(stride=stride, dilation=dilation,
                                   apply_relu=apply_relu, skip_mode=skip_mode,
                                   n_halo=n_halo, skip_stride=skip_stride,
                                   mm_dtype=MATMUL_DTYPE)

    out = pl.pallas_call(
        kernel,
        out_shape=jax.ShapeDtypeStruct((N, Ho, Wo, cpad), x.dtype),
        grid_spec=pltpu.PrefetchScalarGridSpec(
            num_scalar_prefetch=0,
            grid=(N, nH, n_ct),
            in_specs=in_specs,
            out_specs=pl.BlockSpec((1, tho, Wo, tcout),
                                   lambda n, h, j: (n, h, 0, j)),
            scratch_shapes=[pltpu.VMEM((tho * Wo, ktot), jnp.float32)]),
        compiler_params=pltpu.CompilerParams(
            # N and H tiles are independent ("parallel" -> megacore sharding);
            # Cout must stay "arbitrary" because of the j==0 scratch reuse.
            dimension_semantics=("parallel", "parallel", "arbitrary"),
            vmem_limit_bytes=vmem_limit),
    )(*args)

    if cpad != cout:
        out = out[..., :cout]
    return out


# ---------------------------------------------------------------------------
# Parameters (deterministic, synthetic) with BN folded into the conv weights
# ---------------------------------------------------------------------------
def _bn_scale_shift(key, c):
    k1, k2, k3, k4 = jax.random.split(key, 4)
    gamma = 1.0 + 0.1 * jax.random.normal(k1, (c,), jnp.float32)
    beta = 0.1 * jax.random.normal(k2, (c,), jnp.float32)
    mean = 0.1 * jax.random.normal(k3, (c,), jnp.float32)
    var = 1.0 + 0.1 * jnp.abs(jax.random.normal(k4, (c,), jnp.float32))
    scale = gamma / jnp.sqrt(var + _EPS)
    shift = beta - mean * scale
    return scale, shift


def build_block_params(key, inplanes, planes, reps, stride=1, dilation=1,
                       start_with_relu=True, grow_first=True, is_last=False):
    """Mirrors Block.__init__; BN folded: dw*=s1, pw*=s2, bias=(b1@pw)*s2+b2."""
    unit_specs = []                          # (cin, cout, stride, dilation)
    filters = inplanes
    if grow_first:
        unit_specs.append((inplanes, planes, 1, dilation))
        filters = planes
    for _ in range(reps - 1):
        unit_specs.append((filters, filters, 1, dilation))
    if not grow_first:
        unit_specs.append((inplanes, planes, 1, dilation))
    if stride != 1:
        unit_specs.append((planes, planes, 2, 1))
    if stride == 1 and is_last:
        unit_specs.append((planes, planes, 1, 1))

    relu_flags = [True] * len(unit_specs)
    if not start_with_relu and relu_flags:
        relu_flags[0] = False

    keys = jax.random.split(key, len(unit_specs) + 1)
    units = []
    for (cin, cout, s, d), kk, relu in zip(unit_specs, keys[:-1], relu_flags):
        k_dw, k_pw, k_bn1, k_bn2 = jax.random.split(kk, 4)
        dw = jax.random.normal(k_dw, (3, 3, cin), jnp.float32) * (1.0 / 3.0)
        pw = jax.random.normal(k_pw, (cin, cout), jnp.float32) * (cin ** -0.5)
        s1, b1 = _bn_scale_shift(k_bn1, cin)
        s2, b2 = _bn_scale_shift(k_bn2, cout)
        dw_f = dw * s1[None, None, :]            # BN1 scale -> depthwise weights
        pw_f = pw * s2[None, :]                  # BN2 scale -> pointwise columns
        bias = (b1 @ pw) * s2 + b2               # BN1 shift through pw + BN2 shift
        units.append(dict(dw=dw_f, pw=pw_f, bias=bias.reshape(1, cout),
                          stride=s, dilation=d, relu=relu))

    skip = None
    if planes != inplanes or stride != 1:
        k_w, k_bn = jax.random.split(keys[-1])
        w = jax.random.normal(k_w, (inplanes, planes), jnp.float32) * (inplanes ** -0.5)
        ss, sb = _bn_scale_shift(k_bn, planes)
        skip = dict(w=w * ss[None, :], b=sb.reshape(1, planes), stride=stride)

    return dict(units=units, skip=skip)


# ---------------------------------------------------------------------------
# Block forward (NCHW in / NCHW out, like PyTorch)
# ---------------------------------------------------------------------------
def block_forward(x_nchw, params):
    x = jnp.transpose(x_nchw, (0, 2, 3, 1))       # NCHW -> NHWC
    inp = x
    h = x
    units = params["units"]
    for idx, u in enumerate(units):
        is_last = idx == len(units) - 1
        if not is_last:
            h = sep_conv_unit(h, u["dw"], u["pw"], u["bias"],
                              stride=u["stride"], dilation=u["dilation"],
                              apply_relu=u["relu"])
        elif params["skip"] is not None:
            sk = params["skip"]
            h = sep_conv_unit(h, u["dw"], u["pw"], u["bias"] + sk["b"],
                              stride=u["stride"], dilation=u["dilation"],
                              apply_relu=u["relu"],
                              skip_proj=(inp, sk["w"], sk["stride"]))
        else:
            h = sep_conv_unit(h, u["dw"], u["pw"], u["bias"],
                              stride=u["stride"], dilation=u["dilation"],
                              apply_relu=u["relu"], skip_add=inp)
    return jnp.transpose(h, (0, 3, 1, 2))         # NHWC -> NCHW


# ---------------------------------------------------------------------------
# Pure-JAX reference (same folded params) for a tolerance check
# ---------------------------------------------------------------------------
def _sep_unit_ref(x, dw, pw, bias, *, stride, dilation, apply_relu):
    if apply_relu:
        x = jnp.maximum(x, 0.0)
    pad = dilation
    xp = jnp.pad(x, ((0, 0), (pad, pad), (pad, pad), (0, 0)))
    cin = x.shape[-1]
    y = jax.lax.conv_general_dilated(
        xp, dw.reshape(3, 3, 1, cin),
        window_strides=(stride, stride), padding="VALID",
        rhs_dilation=(dilation, dilation),
        dimension_numbers=("NHWC", "HWIO", "NHWC"),
        feature_group_count=cin,
        precision=jax.lax.Precision.HIGHEST)
    y = jnp.einsum("nhwc,cd->nhwd", y, pw,
                   precision=jax.lax.Precision.HIGHEST) + bias[0]
    return y


def block_forward_ref(x_nchw, params):
    x = jnp.transpose(x_nchw, (0, 2, 3, 1))
    inp = x
    h = x
    for u in params["units"]:
        h = _sep_unit_ref(h, u["dw"], u["pw"], u["bias"], stride=u["stride"],
                          dilation=u["dilation"], apply_relu=u["relu"])
    if params["skip"] is not None:
        sk = params["skip"]
        st = sk["stride"]
        s = inp[:, ::st, ::st, :]
        s = jnp.einsum("nhwc,cd->nhwd", s, sk["w"],
                       precision=jax.lax.Precision.HIGHEST) + sk["b"][0]
    else:
        s = inp
    return jnp.transpose(h + s, (0, 3, 1, 2))


# ---------------------------------------------------------------------------
if __name__ == "__main__":
    key = jax.random.PRNGKey(0)
    kx, kp1, kp2 = jax.random.split(key, 3)

    # Block(4, 8, reps=2, stride=2): exercises H-row tiling with halo,
    # the strided unit, and the fused (K-concat) projected skip.
    N, Cin, H, W = 2, 4, 16, 16
    x = jax.random.normal(kx, (N, Cin, H, W), jnp.float32)
    params1 = build_block_params(kp1, Cin, 8, reps=2, stride=2, dilation=1,
                                 start_with_relu=True, grow_first=True,
                                 is_last=False)
    out1 = jax.block_until_ready(block_forward(x, params1))
    assert out1.shape == (N, 8, H // 2, W // 2), out1.shape
    assert out1.dtype == jnp.float32
    ref1 = jax.block_until_ready(block_forward_ref(x, params1))
    assert jnp.allclose(out1, ref1, rtol=2e-2, atol=2e-2), \
        float(jnp.max(jnp.abs(out1 - ref1)))

    # Block(8, 8, reps=2, stride=1, dilation=2): identity-skip fusion +
    # dilation (the middle-flow Xception pattern).
    params2 = build_block_params(kp2, 8, 8, reps=2, stride=1, dilation=2,
                                 start_with_relu=True, grow_first=True,
                                 is_last=False)
    out2 = jax.block_until_ready(block_forward(out1, params2))
    assert out2.shape == (N, 8, H // 2, W // 2), out2.shape
    assert out2.dtype == jnp.float32
    ref2 = jax.block_until_ready(block_forward_ref(out1, params2))
    assert jnp.allclose(out2, ref2, rtol=2e-2, atol=2e-2), \
        float(jnp.max(jnp.abs(out2 - ref2)))

    print("KERNEL_OK")
</pallas_src>

<mosaic_0001>
module attributes {stable_mosaic.version = 11 : i64} {
  func.func @kernel(%arg0: i32, %arg1: i32, %arg2: i32, %arg3: memref<1x8x18x4xf32, #tpu.memory_space<vmem>>, %arg4: memref<1x1x18x4xf32, #tpu.memory_space<vmem>>, %arg5: memref<1x1x18x4xf32, #tpu.memory_space<vmem>>, %arg6: memref<3x3x4xf32, #tpu.memory_space<vmem>>, %arg7: memref<4x8xf32, #tpu.memory_space<vmem>>, %arg8: memref<1x8xf32, #tpu.memory_space<vmem>>, %arg9: memref<1x8x16x8xf32, #tpu.memory_space<vmem>>, %arg10: memref<128x4xf32, #tpu.memory_space<vmem>>) attributes {dimension_semantics = [#tpu.dimension_semantics<parallel>, #tpu.dimension_semantics<parallel>, #tpu.dimension_semantics<arbitrary>], iteration_bounds = array<i64: 2, 2, 1>, scalar_prefetch = 0 : i64, scratch_operands = 1 : i64, tpu.core_type = #tpu.core_type<tc>, window_params = [{transform_indices = @transform_0, window_bounds = array<i64: 1, 8, 18, 4>}, {transform_indices = @transform_1, window_bounds = array<i64: 1, 1, 18, 4>}, {transform_indices = @transform_2, window_bounds = array<i64: 1, 1, 18, 4>}, {pipeline_mode = #tpu.pipeline_mode<synchronous>, transform_indices = @transform_3, window_bounds = array<i64: 3, 3, 4>}, {transform_indices = @transform_4, window_bounds = array<i64: 4, 8>}, {transform_indices = @transform_5, window_bounds = array<i64: 1, 8>}, {transform_indices = @transform_6, window_bounds = array<i64: 1, 8, 16, 8>}]} {
    %c0_i32 = arith.constant 0 : i32
    %0 = arith.cmpi eq, %arg2, %c0_i32 : i32
    %1 = arith.extui %0 : i1 to i32
    %c0_i32_0 = arith.constant 0 : i32
    %2 = arith.cmpi ne, %1, %c0_i32_0 : i32
    scf.if %2 {
      %c0_10 = arith.constant 0 : index
      %c0_11 = arith.constant 0 : index
      %c0_12 = arith.constant 0 : index
      %c0_13 = arith.constant 0 : index
      %11 = vector.load %arg3[%c0_10, %c0_11, %c0_12, %c0_13] : memref<1x8x18x4xf32, #tpu.memory_space<vmem>>, vector<1x8x18x4xf32>
      %12 = vector.shape_cast %11 : vector<1x8x18x4xf32> to vector<8x18x4xf32>
      %c0_14 = arith.constant 0 : index
      %c0_15 = arith.constant 0 : index
      %c0_16 = arith.constant 0 : index
      %c0_17 = arith.constant 0 : index
      %13 = vector.load %arg4[%c0_14, %c0_15, %c0_16, %c0_17] : memref<1x1x18x4xf32, #tpu.memory_space<vmem>>, vector<1x1x18x4xf32>
      %14 = vector.shape_cast %13 : vector<1x1x18x4xf32> to vector<1x18x4xf32>
      %c0_18 = arith.constant 0 : index
      %c0_19 = arith.constant 0 : index
      %c0_20 = arith.constant 0 : index
      %c0_21 = arith.constant 0 : index
      %15 = vector.load %arg5[%c0_18, %c0_19, %c0_20, %c0_21] : memref<1x1x18x4xf32, #tpu.memory_space<vmem>>, vector<1x1x18x4xf32>
      %16 = vector.shape_cast %15 : vector<1x1x18x4xf32> to vector<1x18x4xf32>
      %17 = tpu.concatenate %12, %14, %16 in 0 : vector<8x18x4xf32>, vector<1x18x4xf32>, vector<1x18x4xf32> -> vector<10x18x4xf32>
      %cst_22 = arith.constant 0.000000e+00 : f32
      %18 = vector.broadcast %cst_22 : f32 to vector<10x18x4xf32>
      %19 = arith.maximumf %17, %18 : vector<10x18x4xf32>
      %c0_23 = arith.constant 0 : index
      %c0_24 = arith.constant 0 : index
      %c0_25 = arith.constant 0 : index
      %20 = vector.load %arg6[%c0_23, %c0_24, %c0_25] : memref<3x3x4xf32, #tpu.memory_space<vmem>>, vector<3x3x4xf32>
      %cst_26 = arith.constant 0.000000e+00 : f32
      %21 = vector.broadcast %cst_26 : f32 to vector<8x16x4xf32>
      %22 = vector.extract_strided_slice %19 {offsets = [0, 0, 0], sizes = [8, 16, 4], strides = [1, 1, 1]} : vector<10x18x4xf32> to vector<8x16x4xf32>
      %23 = vector.extract_strided_slice %20 {offsets = [0, 0, 0], sizes = [1, 1, 4], strides = [1, 1, 1]} : vector<3x3x4xf32> to vector<1x1x4xf32>
      %24 = vector.shape_cast %23 : vector<1x1x4xf32> to vector<4xf32>
      %25 = vector.shape_cast %24 : vector<4xf32> to vector<1x1x4xf32>
      %26 = vector.broadcast %25 : vector<1x1x4xf32> to vector<8x16x4xf32>
      %27 = arith.mulf %22, %26 : vector<8x16x4xf32>
      %28 = arith.addf %21, %27 : vector<8x16x4xf32>
      %29 = vector.extract_strided_slice %19 {offsets = [0, 1, 0], sizes = [8, 16, 4], strides = [1, 1, 1]} : vector<10x18x4xf32> to vector<8x16x4xf32>
      %30 = vector.extract_strided_slice %20 {offsets = [0, 1, 0], sizes = [1, 1, 4], strides = [1, 1, 1]} : vector<3x3x4xf32> to vector<1x1x4xf32>
      %31 = vector.shape_cast %30 : vector<1x1x4xf32> to vector<4xf32>
      %32 = vector.shape_cast %31 : vector<4xf32> to vector<1x1x4xf32>
      %33 = vector.broadcast %32 : vector<1x1x4xf32> to vector<8x16x4xf32>
      %34 = arith.mulf %29, %33 : vector<8x16x4xf32>
      %35 = arith.addf %28, %34 : vector<8x16x4xf32>
      %36 = vector.extract_strided_slice %19 {offsets = [0, 2, 0], sizes = [8, 16, 4], strides = [1, 1, 1]} : vector<10x18x4xf32> to vector<8x16x4xf32>
      %37 = vector.extract_strided_slice %20 {offsets = [0, 2, 0], sizes = [1, 1, 4], strides = [1, 1, 1]} : vector<3x3x4xf32> to vector<1x1x4xf32>
      %38 = vector.shape_cast %37 : vector<1x1x4xf32> to vector<4xf32>
      %39 = vector.shape_cast %38 : vector<4xf32> to vector<1x1x4xf32>
      %40 = vector.broadcast %39 : vector<1x1x4xf32> to vector<8x16x4xf32>
      %41 = arith.mulf %36, %40 : vector<8x16x4xf32>
      %42 = arith.addf %35, %41 : vector<8x16x4xf32>
      %43 = vector.extract_strided_slice %19 {offsets = [1, 0, 0], sizes = [8, 16, 4], strides = [1, 1, 1]} : vector<10x18x4xf32> to vector<8x16x4xf32>
      %44 = vector.extract_strided_slice %20 {offsets = [1, 0, 0], sizes = [1, 1, 4], strides = [1, 1, 1]} : vector<3x3x4xf32> to vector<1x1x4xf32>
      %45 = vector.shape_cast %44 : vector<1x1x4xf32> to vector<4xf32>
      %46 = vector.shape_cast %45 : vector<4xf32> to vector<1x1x4xf32>
      %47 = vector.broadcast %46 : vector<1x1x4xf32> to vector<8x16x4xf32>
      %48 = arith.mulf %43, %47 : vector<8x16x4xf32>
      %49 = arith.addf %42, %48 : vector<8x16x4xf32>
      %50 = vector.extract_strided_slice %19 {offsets = [1, 1, 0], sizes = [8, 16, 4], strides = [1, 1, 1]} : vector<10x18x4xf32> to vector<8x16x4xf32>
      %51 = vector.extract_strided_slice %20 {offsets = [1, 1, 0], sizes = [1, 1, 4], strides = [1, 1, 1]} : vector<3x3x4xf32> to vector<1x1x4xf32>
      %52 = vector.shape_cast %51 : vector<1x1x4xf32> to vector<4xf32>
      %53 = vector.shape_cast %52 : vector<4xf32> to vector<1x1x4xf32>
      %54 = vector.broadcast %53 : vector<1x1x4xf32> to vector<8x16x4xf32>
      %55 = arith.mulf %50, %54 : vector<8x16x4xf32>
      %56 = arith.addf %49, %55 : vector<8x16x4xf32>
      %57 = vector.extract_strided_slice %19 {offsets = [1, 2, 0], sizes = [8, 16, 4], strides = [1, 1, 1]} : vector<10x18x4xf32> to vector<8x16x4xf32>
      %58 = vector.extract_strided_slice %20 {offsets = [1, 2, 0], sizes = [1, 1, 4], strides = [1, 1, 1]} : vector<3x3x4xf32> to vector<1x1x4xf32>
      %59 = vector.shape_cast %58 : vector<1x1x4xf32> to vector<4xf32>
      %60 = vector.shape_cast %59 : vector<4xf32> to vector<1x1x4xf32>
      %61 = vector.broadcast %60 : vector<1x1x4xf32> to vector<8x16x4xf32>
      %62 = arith.mulf %57, %61 : vector<8x16x4xf32>
      %63 = arith.addf %56, %62 : vector<8x16x4xf32>
      %64 = vector.extract_strided_slice %19 {offsets = [2, 0, 0], sizes = [8, 16, 4], strides = [1, 1, 1]} : vector<10x18x4xf32> to vector<8x16x4xf32>
      %65 = vector.extract_strided_slice %20 {offsets = [2, 0, 0], sizes = [1, 1, 4], strides = [1, 1, 1]} : vector<3x3x4xf32> to vector<1x1x4xf32>
      %66 = vector.shape_cast %65 : vector<1x1x4xf32> to vector<4xf32>
      %67 = vector.shape_cast %66 : vector<4xf32> to vector<1x1x4xf32>
      %68 = vector.broadcast %67 : vector<1x1x4xf32> to vector<8x16x4xf32>
      %69 = arith.mulf %64, %68 : vector<8x16x4xf32>
      %70 = arith.addf %63, %69 : vector<8x16x4xf32>
      %71 = vector.extract_strided_slice %19 {offsets = [2, 1, 0], sizes = [8, 16, 4], strides = [1, 1, 1]} : vector<10x18x4xf32> to vector<8x16x4xf32>
      %72 = vector.extract_strided_slice %20 {offsets = [2, 1, 0], sizes = [1, 1, 4], strides = [1, 1, 1]} : vector<3x3x4xf32> to vector<1x1x4xf32>
      %73 = vector.shape_cast %72 : vector<1x1x4xf32> to vector<4xf32>
      %74 = vector.shape_cast %73 : vector<4xf32> to vector<1x1x4xf32>
      %75 = vector.broadcast %74 : vector<1x1x4xf32> to vector<8x16x4xf32>
      %76 = arith.mulf %71, %75 : vector<8x16x4xf32>
      %77 = arith.addf %70, %76 : vector<8x16x4xf32>
      %78 = vector.extract_strided_slice %19 {offsets = [2, 2, 0], sizes = [8, 16, 4], strides = [1, 1, 1]} : vector<10x18x4xf32> to vector<8x16x4xf32>
      %79 = vector.extract_strided_slice %20 {offsets = [2, 2, 0], sizes = [1, 1, 4], strides = [1, 1, 1]} : vector<3x3x4xf32> to vector<1x1x4xf32>
      %80 = vector.shape_cast %79 : vector<1x1x4xf32> to vector<4xf32>
      %81 = vector.shape_cast %80 : vector<4xf32> to vector<1x1x4xf32>
      %82 = vector.broadcast %81 : vector<1x1x4xf32> to vector<8x16x4xf32>
      %83 = arith.mulf %78, %82 : vector<8x16x4xf32>
      %84 = arith.addf %77, %83 : vector<8x16x4xf32>
      %85 = vector.shape_cast %84 : vector<8x16x4xf32> to vector<128x4xf32>
      %c0_27 = arith.constant 0 : index
      %c0_28 = arith.constant 0 : index
      %86 = vector.load %arg10[%c0_27, %c0_28] : memref<128x4xf32, #tpu.memory_space<vmem>>, vector<128x4xf32>
      tpu.vector_store %arg10[%c0_27, %c0_28], %85 {strides = array<i32>} : memref<128x4xf32, #tpu.memory_space<vmem>>, vector<128x4xf32>,
    } else {
    }
    %c0 = arith.constant 0 : index
    %c0_1 = arith.constant 0 : index
    %3 = vector.load %arg10[%c0, %c0_1] : memref<128x4xf32, #tpu.memory_space<vmem>>, vector<128x4xf32>
    %c0_2 = arith.constant 0 : index
    %c0_3 = arith.constant 0 : index
    %4 = vector.load %arg7[%c0_2, %c0_3] : memref<4x8xf32, #tpu.memory_space<vmem>>, vector<4x8xf32>
    %cst = arith.constant dense<0.000000e+00> : vector<128x8xf32>
    %5 = tpu.matmul %3, %4, %cst {dimension_numbers = #tpu.dot_dimension_numbers<[1], [0], [0], [1], [0, 0, 1, 1], [], []>} : vector<128x4xf32>, vector<4x8xf32>, vector<128x8xf32> -> vector<128x8xf32>
    %c0_4 = arith.constant 0 : index
    %c0_5 = arith.constant 0 : index
    %6 = vector.load %arg8[%c0_4, %c0_5] : memref<1x8xf32, #tpu.memory_space<vmem>>, vector<1x8xf32>
    %7 = vector.broadcast %6 : vector<1x8xf32> to vector<128x8xf32>
    %8 = arith.addf %5, %7 : vector<128x8xf32>
    %9 = vector.shape_cast %8 : vector<128x8xf32> to vector<1x8x16x8xf32>
    %c0_6 = arith.constant 0 : index
    %c0_7 = arith.constant 0 : index
    %c0_8 = arith.constant 0 : index
    %c0_9 = arith.constant 0 : index
    %10 = vector.load %arg9[%c0_6, %c0_7, %c0_8, %c0_9] : memref<1x8x16x8xf32, #tpu.memory_space<vmem>>, vector<1x8x16x8xf32>
    tpu.vector_store %arg9[%c0_6, %c0_7, %c0_8, %c0_9], %9 {strides = array<i32>} : memref<1x8x16x8xf32, #tpu.memory_space<vmem>>, vector<1x8x16x8xf32>,
    return
  }
  func.func @transform_0(%arg0: i32, %arg1: i32, %arg2: i32) -> (i32, i32, i32, i32) {
    %c0_i32 = arith.constant 0 : i32
    %c0_i32_0 = arith.constant 0 : i32
    %c0_i32_1 = arith.constant 0 : i32
    return %arg0, %arg1, %c0_i32, %c0_i32_0 : i32, i32, i32, i32
  }
  func.func @transform_1(%arg0: i32, %arg1: i32, %arg2: i32) -> (i32, i32, i32, i32) {
    %c1_i32 = arith.constant 1 : i32
    %0 = arith.addi %arg1, %c1_i32 : i32
    %c8_i32 = arith.constant 8 : i32
    %1 = arith.muli %0, %c8_i32 : i32
    %c0_i32 = arith.constant 0 : i32
    %2 = arith.addi %1, %c0_i32 : i32
    %c0_i32_0 = arith.constant 0 : i32
    %c0_i32_1 = arith.constant 0 : i32
    %c0_i32_2 = arith.constant 0 : i32
    return %arg0, %2, %c0_i32_0, %c0_i32_1 : i32, i32, i32, i32
  }
  func.func @transform_2(%arg0: i32, %arg1: i32, %arg2: i32) -> (i32, i32, i32, i32) {
    %c1_i32 = arith.constant 1 : i32
    %0 = arith.addi %arg1, %c1_i32 : i32
    %c8_i32 = arith.constant 8 : i32
    %1 = arith.muli %0, %c8_i32 : i32
    %c1_i32_0 = arith.constant 1 : i32
    %2 = arith.addi %1, %c1_i32_0 : i32
    %c0_i32 = arith.constant 0 : i32
    %c0_i32_1 = arith.constant 0 : i32
    %c0_i32_2 = arith.constant 0 : i32
    return %arg0, %2, %c0_i32, %c0_i32_1 : i32, i32, i32, i32
  }
  func.func @transform_3(%arg0: i32, %arg1: i32, %arg2: i32) -> (i32, i32, i32) {
    %c0_i32 = arith.constant 0 : i32
    %c0_i32_0 = arith.constant 0 : i32
    %c0_i32_1 = arith.constant 0 : i32
    %c0_i32_2 = arith.constant 0 : i32
    return %c0_i32, %c0_i32_0, %c0_i32_1 : i32, i32, i32
  }
  func.func @transform_4(%arg0: i32, %arg1: i32, %arg2: i32) -> (i32, i32) {
    %c0_i32 = arith.constant 0 : i32
    %c0_i32_0 = arith.constant 0 : i32
    return %c0_i32, %arg2 : i32, i32
  }
  func.func @transform_5(%arg0: i32, %arg1: i32, %arg2: i32) -> (i32, i32) {
    %c0_i32 = arith.constant 0 : i32
    %c0_i32_0 = arith.constant 0 : i32
    return %c0_i32, %arg2 : i32, i32
  }
  func.func @transform_6(%arg0: i32, %arg1: i32, %arg2: i32) -> (i32, i32, i32, i32) {
    %c0_i32 = arith.constant 0 : i32
    %c0_i32_0 = arith.constant 0 : i32
    return %arg0, %arg1, %c0_i32, %arg2 : i32, i32, i32, i32
  }
}

</mosaic_0001>

<bundles_post_ra>
// kernel: tpu_custom_call.1
= control target key start
LH: loop header
LB: loop body
LE: loop exit
PB: predicated region body
PF: predicated region fallthrough
CT: control target
= control target key end

     0   :  { %s2045_s21 = smov 0   ;;  %s2047_s22 = smov 0   ;;  %s3137_s0 = inlined_call_operand.vmem [shape: f32[2,18,18,4], index: 0, kind: input, shape index: {}]   ;;  %s3138_s1 = inlined_call_operand.vmem [shape: f32[2,18,18,4], index: 1, kind: input, shape index: {}]   ;;  %s3139_s2 = inlined_call_operand.vmem [shape: f32[2,18,18,4], index: 2, kind: input, shape index: {}]   ;;  %s3140_s3 = inlined_call_operand.vmem [shape: f32[3,3,4], index: 3, kind: input, shape index: {}]   ;;  %s3141_s4 = inlined_call_operand.vmem [shape: f32[4,8], index: 4, kind: input, shape index: {}]   ;;  %s3142_s5 = inlined_call_operand.vmem [shape: f32[1,8], index: 5, kind: input, shape index: {}]   ;;  %s3143_s6 = inlined_call_operand.vmem [shape: f32[2,16,16,8], index: 6, kind: output, shape index: {}]  }
   0x1   :  { %s2049_s23 = smov 0   ;;  %s2051_s24 = smov 0  }
   0x2   :  { %s2053_s25 = smov 0  }
   0x3 LB: > { %s31_s26 = sadd.s32 1, %s2000_s23  ;;  %s35_s27 = sadd.s32 1, %s2004_s24  ;;  %s2008_s25 = sphi %s2053_s25, %s16_s25   ;;  %s2004_s24 = sphi %s2051_s24, %s3188_s24   ;;  %s2000_s23 = sphi %s2049_s23, %s3187_s23   ;;  %s1996_s22 = sphi %s2047_s22, %s3186_s22   ;;  %s1992_s21 = sphi %s2045_s21, %s3185_s21  }
   0x4   : > { %p33_p0 = scmp.ge.s32.totalorder %s31_s26, 2  ;;  %p1838_p1 = scmp.ge.s32.totalorder %s2008_s25, 1 }
   0x5   : > { %p322_p2 = scmp.lt.s32.totalorder %s2008_s25, 5 }
   0x6   : > { %s3190_s26 = smov (%p33_p0, %s31_s26), 0  ;;  %s3192_s27 = smov (!%p33_p0, %s35_s27), %s2004_s24 }
   0x7   : > { %p323_p3 = pnand %p1838_p1, %p322_p2  ;;  %p37_p4 = scmp.ge.s32.totalorder %s3192_s27, 2 }
   0x8   : > { %s2078_s30 = sshll.u32 (!%p323_p3), %s1992_s21, 3  ;;  %p406_p5 = scmp.lt.s32.totalorder (!%p323_p3), %s1996_s22, 1 }
   0x9   : > { %s3194_s27 = smov (%p37_p4, %s3192_s27), 0  ;;  %326 = sbr.rel (%p323_p3) target bundleno = 391 (0x187), region = 44 }
   0xa   : > { %p408_p6 = scmp.lt.s32.totalorder (!%p323_p3), %s2078_s30, 17  ;;  %s2088_s9 = sadd.s32 (!%p323_p3), 8, %s2078_s30 }
   0xb   : > { %p425_p7 = scmp.lt.s32.totalorder (!%p323_p3), %s2088_s9, 17  ;;  %s436_s29 = sadd.s32 (!%p323_p3), 1, %s2088_s9 }
   0xc   : > { %p2171_p8 = scmp.lt.s32.totalorder (!%p323_p3), %s436_s29, 17  ;;  %p459_p9 = scmp.lt.s32.totalorder (!%p323_p3), %s2078_s30, 15 }
   0xe   : > { %v1424_v0 = vld [vmem:[%s3141_s4] sm:$0xf]  ;;  %vm1481_vm0 = vcmask 1043456   ;;  %v537_v1 = vlaneseq  ;;  %s3196_s22 = smov (!%p406_p5, %s1996_s22), 1  ;;  %v535_v7 = vld [vmem:[%s3140_s3 + $0x4] sm:$0x7] }
   0xf   : > { %1898 = vmatprep.subr.msk.mxu0 %vm1481_vm0, %v1424_v0  ;;  %1924 = vmatprep.subr.msk.mxu1 %vm1481_vm0, %v1424_v0  ;;  %s409_s7 = scalar_select %p408_p6, %s2078_s30, 17  ;;  %v534_v6 = vld [vmem:[%s3140_s3] sm:$0x7]  ;;  %v536_v8 = vld [vmem:[%s3140_s3 + $0x8] sm:$0x7]  ;;  %vm625_vm1 = vcmask 1046528  }
  0x10   : > { %1899 = vmatpush3.msk.msra.mxu0 %vm1481_vm0, %v1424_v0  ;;  %1925 = vmatpush3.msk.msra.mxu1 %vm1481_vm0, %v1424_v0  ;;  %v538_v2 = vshrl.u32 %v537_v1, 7  ;;  %s2085_s8 = smul.u32 54, %s3196_s22  ;;  %vm750_vm2 = vcmask 1045504   ;;  %s3198_s29 = smov (!%p2171_p8, %s436_s29), 17  ;;  %vm1391_vm3 = vcmask 31744   ;;  %vm1630_vm4 = vcmask 64512  }
  0x11   : > { %s1926_s10 = smul.u32 3, %s409_s7  ;;  %s3200_s30 = smov (!%p459_p9, %s2078_s30), 15 }
  0x12   : > { %v539_v3 = vsub.s32 0, %v538_v2  ;;  %v575_v4 = vsub.s32 1, %v538_v2  ;;  %v700_v5 = vsub.s32 2, %v538_v2  ;;  %s426_s28 = scalar_select %p425_p7, %s2088_s9, 17 }
  0x13   : > { %s412_s13 = sadd.s32 %s2085_s8, %s1926_s10  ;;  %s1929_s9 = smul.u32 3, %s3198_s29 }
  0x14   : > { %s1840_s18 = sshll.u32 %s412_s13, 3  ;;  %v2106_v9 = vrot.slane %v534_v6, %v539_v3  ;;  %v2108_v10 = vrot.slane %v534_v6, %v575_v4  ;;  %v2110_v11 = vrot.slane %v534_v6, %v700_v5  ;;  %v2115_v15 = vrot.slane %v535_v7, %v539_v3  ;;  %s1928_s7 = smul.u32 3, %s426_s28 }
  0x15   : > { %s2104_s21 = scalar_lea.vmem %s3137_s0, %s1840_s18  ;;  %v2117_v16 = vrot.slane %v535_v7, %v575_v4  ;;  %v2119_v17 = vrot.slane %v535_v7, %v700_v5  ;;  %v2121_v18 = vrot.slane %v536_v8, %v539_v3  ;;  %v2131_v24 = vrot.slane %v536_v8, %v575_v4  ;;  %s2243_s12 = sadd.s32 %s1929_s9, %s2085_s8 }
  0x16   : > { %v474_v12 = vld [vmem:[%s2104_s21] sm:$0xff]  ;;  %v475_v13 = vld [vmem:[%s2104_s21 + $0x8] sm:$0xff]  ;;  %v477_v14 = vld [vmem:[%s2104_s21 + $0x18] sm:$0xff]  ;;  %v2133_v25 = vrot.slane %v536_v8, %v700_v5  ;;  %s2167_s10 = sadd.s32 %s1928_s7, %s2085_s8  ;;  %s1847_s8 = sshll.u32 %s3196_s22, 5 }
  0x17   : > { %v478_v19 = vld [vmem:[%s2104_s21 + $0x20] sm:$0xff]  ;;  %v480_v20 = vld [vmem:[%s2104_s21 + $0x30] sm:$0xff]  ;;  %v481_v21 = vld [vmem:[%s2104_s21 + $0x38] sm:$0xff]  ;;  %v504_v22 = vmax.f32 %v474_v12, 0.0  ;;  %v2129_v23 = vmax.f32 %v475_v13, 0.0  ;;  %v2135_v26 = vmax.f32 %v477_v14, 0.0 }
  0x18   : > { %v2137_v27 = vmax.f32 %v478_v19, 0.0  ;;  %v2139_v28 = vmax.f32 %v480_v20, 0.0  ;;  %v2141_v29 = vmax.f32 %v481_v21, 0.0  ;;  %v486_v50 = vld [vmem:[%s2104_s21 + $0x60] sm:$0xff]  ;;  %v487_v51 = vld [vmem:[%s2104_s21 + $0x68] sm:$0xff]  ;;  %v489_v56 = vld [vmem:[%s2104_s21 + $0x78] sm:$0xff] }
  0x19   : > { %v541_v30 = vmul.f32 %v2106_v9, %v504_v22  ;;  %v577_v31 = vmul.f32 %v2108_v10, %v504_v22  ;;  %v2148_v32 = vmul.f32 %v2108_v10, %v2129_v23  ;;  %v702_v33 = vmul.f32 %v2110_v11, %v504_v22  ;;  %v490_v61 = vld [vmem:[%s2104_s21 + $0x80] sm:$0xff]  ;;  %v492_v62 = vld [vmem:[%s2104_s21 + $0x90] sm:$0xff]  ;;  %v493_v63 = vld [vmem:[%s2104_s21 + $0x98] sm:$0xff]  ;;  %s1846_s22 = sshll.u32 %s3200_s30, 1  ;;  %s1842_s30 = sshll.u32 %s2167_s10, 3 }
  0x1a   : > { %v2153_v34 = vmul.f32 %v2110_v11, %v2129_v23  ;;  %v827_v35 = vmul.f32 %v2115_v15, %v2135_v26  ;;  %v863_v36 = vmul.f32 %v2117_v16, %v2135_v26  ;;  %v2161_v37 = vmul.f32 %v2117_v16, %v2137_v27  ;;  %s2447_s13 = sadd.s32 %s1847_s8, %s1846_s22  ;;  %s2665_s16 = scalar_lea.vmem %s3138_s1, %s1842_s30 }
  0x1b   : > { %v626_v38 = vrot.slane %v577_v31, 1  ;;  %v627_v39 = vrot.slane %v2148_v32, 1  ;;  %v751_v40 = vrot.slane %v702_v33, 2  ;;  %v987_v41 = vmul.f32 %v2119_v17, %v2135_v26  ;;  %s1844_s17 = sshll.u32 %s2243_s12, 3 }
  0x1c   : > { %v752_v42 = vrot.slane %v2153_v34, 2  ;;  %v911_v43 = vrot.slane %v863_v36, 1  ;;  %v912_v44 = vrot.slane %v2161_v37, 1  ;;  %v2179_v45 = vmul.f32 %v2119_v17, %v2137_v27  ;;  %s2889_s20 = scalar_lea.vmem %s3139_s2, %s1844_s17 }
  0x1d   : > { %v628_v46 = vsel %vm625_vm1, %v626_v38, %v627_v39  ;;  %v1035_v47 = vrot.slane %v987_v41, 2  ;;  %v1111_v48 = vmul.f32 %v2121_v18, %v2139_v28  ;;  %v1147_v49 = vmul.f32 %v2131_v24, %v2139_v28 }
  0x1e   : > { %v682_v52 = vadd.f32 %v628_v46, %v541_v30  ;;  %v753_v53 = vsel %vm750_vm2, %v751_v40, %v752_v42  ;;  %v913_v54 = vsel %vm625_vm1, %v911_v43, %v912_v44  ;;  %v1036_v55 = vrot.slane %v2179_v45, 2 }
  0x1f   : > { %v2200_v57 = vmul.f32 %v2131_v24, %v2141_v29  ;;  %v1195_v58 = vrot.slane %v1147_v49, 1  ;;  %v1271_v59 = vmul.f32 %v2133_v25, %v2139_v28  ;;  %v2206_v60 = vmul.f32 %v2133_v25, %v2141_v29 }
  0x20   : > { %v807_v0 = vadd.f32 %v753_v53, %v682_v52  ;;  %v1037_v1 = vsel %vm750_vm2, %v1035_v47, %v1036_v55  ;;  %v2218_v2 = vmax.f32 %v486_v50, 0.0  ;;  %v2220_v3 = vmax.f32 %v487_v51, 0.0 }
  0x21   : > { %v1196_v4 = vrot.slane %v2200_v57, 1  ;;  %v1319_v5 = vrot.slane %v1271_v59, 2  ;;  %v1320_v6 = vrot.slane %v2206_v60, 2  ;;  %v2224_v7 = vmax.f32 %v489_v56, 0.0 }
  0x22   : > { %v843_v8 = vadd.f32 %v827_v35, %v807_v0  ;;  %v2226_v12 = vmax.f32 %v490_v61, 0.0  ;;  %v2228_v13 = vmax.f32 %v492_v62, 0.0  ;;  %v2230_v14 = vmax.f32 %v493_v63, 0.0  ;;  %v476_v61 = vld [vmem:[%s2104_s21 + $0x10] sm:$0x3] }
  0x23   : > { %v1197_v19 = vsel %vm625_vm1, %v1195_v58, %v1196_v4  ;;  %v1321_v20 = vsel %vm750_vm2, %v1319_v5, %v1320_v6  ;;  %v549_v21 = vmul.f32 %v2106_v9, %v2218_v2  ;;  %v589_v22 = vmul.f32 %v2108_v10, %v2218_v2 }
  0x24   : > { %v967_v30 = vadd.f32 %v913_v54, %v843_v8  ;;  %v2247_v31 = vmul.f32 %v2108_v10, %v2220_v3  ;;  %v714_v33 = vmul.f32 %v2110_v11, %v2218_v2  ;;  %v2253_v35 = vmul.f32 %v2110_v11, %v2220_v3 }
  0x25   : > { %v646_v36 = vrot.slane %v589_v22, 1  ;;  %v835_v38 = vmul.f32 %v2115_v15, %v2224_v7  ;;  %v875_v40 = vmul.f32 %v2117_v16, %v2224_v7  ;;  %v2261_v41 = vmul.f32 %v2117_v16, %v2226_v12 }
  0x26   : > { %v1091_v43 = vadd.f32 %v1037_v1, %v967_v30  ;;  %v3149_v46 = vrot.slane %v2247_v31, 1  ;;  %v771_v47 = vrot.slane %v714_v33, 2  ;;  %v3148_v49 = vrot.slane %v2253_v35, 2  ;;  %v479_v30 = vld [vmem:[%s2104_s21 + $0x28] sm:$0x3] }
  0x27   : > { %v931_v50 = vrot.slane %v875_v40, 1  ;;  %v3144_v51 = vrot.slane %v2261_v41, 1  ;;  %v999_v52 = vmul.f32 %v2119_v17, %v2224_v7  ;;  %v2270_v53 = vmul.f32 %v2119_v17, %v2226_v12 }
  0x28   : > { %v1127_v54 = vadd.f32 %v1111_v48, %v1091_v43  ;;  %v648_v56 = vsel %vm625_vm1, %v646_v36, %v3149_v46  ;;  %v773_v58 = vsel %vm750_vm2, %v771_v47, %v3148_v49  ;;  %v1119_v59 = vmul.f32 %v2121_v18, %v2228_v13 }
  0x29   : > { %v690_v62 = vadd.f32 %v648_v56, %v549_v21  ;;  %v933_v63 = vsel %vm625_vm1, %v931_v50, %v3144_v51  ;;  %v1055_v0 = vrot.slane %v999_v52, 2  ;;  %v3147_v48 = vrot.slane %v2270_v53, 2  ;;  %v482_v21 = vld [vmem:[%s2104_s21 + $0x40] sm:$0x3] }
  0x2a   : > { %v1251_v1 = vadd.f32 %v1197_v19, %v1127_v54  ;;  %v1159_v5 = vmul.f32 %v2131_v24, %v2228_v13  ;;  %v2289_v8 = vmul.f32 %v2131_v24, %v2230_v14  ;;  %v1283_v22 = vmul.f32 %v2133_v25, %v2228_v13 }
  0x2b   : > { %v815_v33 = vadd.f32 %v773_v58, %v690_v62  ;;  %v1057_v36 = vsel %vm750_vm2, %v1055_v0, %v3147_v48  ;;  %v2300_v19 = vmul.f32 %v2133_v25, %v2230_v14  ;;  %v506_v40 = vmax.f32 %v476_v61, 0.0 }
  0x2c   : > { %v1375_v43 = vadd.f32 %v1321_v20, %v1251_v1  ;;  %v1215_v47 = vrot.slane %v1159_v5, 1  ;;  %v3146_v50 = vrot.slane %v2289_v8, 1  ;;  %v1339_v52 = vrot.slane %v1283_v22, 2 }
  0x2d   : > { %v851_v54 = vadd.f32 %v835_v38, %v815_v33  ;;  %v3145_v56 = vrot.slane %v2300_v19, 2  ;;  %v2304_v51 = vmax.f32 %v479_v30, 0.0  ;;  %v2306_v58 = vmax.f32 %v482_v21, 0.0  ;;  %v488_v30 = vld [vmem:[%s2104_s21 + $0x70] sm:$0x3] }
  0x2e   : > { %1392 = vst.msk [vmem:[#allocation2] sm:$0xff] %vm1391_vm3, %v1375_v43  ;;  %v1217_v62 = vsel %vm625_vm1, %v1215_v47, %v3146_v50  ;;  %v542_v20 = vmul.f32 %v2106_v9, %v2129_v23  ;;  %v579_v61 = vmul.f32 %v2108_v10, %v506_v40  ;;  %v704_v38 = vmul.f32 %v2110_v11, %v506_v40 }
  0x2f   : > { %v975_v0 = vadd.f32 %v933_v63, %v851_v54  ;;  %v1341_v1 = vsel %vm750_vm2, %v1339_v52, %v3145_v56  ;;  %v828_v5 = vmul.f32 %v2115_v15, %v2137_v27  ;;  %v865_v22 = vmul.f32 %v2117_v16, %v2304_v51  ;;  %v491_v54 = vld [vmem:[%s2104_s21 + $0x88] sm:$0x3]  ;;  %v494_v56 = vld [vmem:[%s2104_s21 + $0xa0] sm:$0x3] }
  0x30   : > { %v629_v21 = vrot.slane %v579_v61, 1  ;;  %v754_v23 = vrot.slane %v704_v38, 2  ;;  %v989_v33 = vmul.f32 %v2119_v17, %v2304_v51  ;;  %v1112_v40 = vmul.f32 %v2121_v18, %v2141_v29 }
  0x31   : > { %v1099_v63 = vadd.f32 %v1057_v36, %v975_v0  ;;  %v914_v43 = vrot.slane %v865_v22, 1  ;;  %v1149_v47 = vmul.f32 %v2131_v24, %v2306_v58  ;;  %v1273_v52 = vmul.f32 %v2133_v25, %v2306_v58 }
  0x32   : > { %v630_v61 = vsel %vm625_vm1, %v627_v39, %v629_v21  ;;  %v755_v38 = vsel %vm750_vm2, %v752_v42, %v754_v23  ;;  %v1038_v50 = vrot.slane %v989_v33, 2  ;;  %v2340_v48 = vmax.f32 %v488_v30, 0.0 }
  0x33   : > { %v1135_v36 = vadd.f32 %v1119_v59, %v1099_v63  ;;  %v683_v0 = vadd.f32 %v630_v61, %v542_v20  ;;  %v915_v22 = vsel %vm625_vm1, %v912_v44, %v914_v43  ;;  %v1198_v49 = vrot.slane %v1149_v47, 1  ;;  %v484_v63 = vld [vmem:[%s2104_s21 + $0x50] sm:$0xff] }
  0x34   : > { %v1039_v32 = vsel %vm750_vm2, %v1036_v55, %v1038_v50  ;;  %v1322_v46 = vrot.slane %v1273_v52, 2  ;;  %v2348_v39 = vmax.f32 %v491_v54, 0.0  ;;  %v2350_v34 = vmax.f32 %v494_v56, 0.0  ;;  %v483_v56 = vld [vmem:[%s2104_s21 + $0x48] sm:$0xff] }
  0x35   : > { %v1408_v42 = vld [vmem:[#allocation2] sm:$0xff]  ;;  %v1259_v30 = vadd.f32 %v1217_v62, %v1135_v36  ;;  %v808_v21 = vadd.f32 %v755_v38, %v683_v0  ;;  %v1199_v37 = vsel %vm625_vm1, %v1196_v4, %v1198_v49  ;;  %v550_v44 = vmul.f32 %v2106_v9, %v2220_v3 }
  0x36   : > { %1900 = vmatprep.mubr.msk.f32.mxu0 %vm1391_vm3, %v1408_v42  ;;  %v1323_v45 = vsel %vm750_vm2, %v1320_v6, %v1322_v46  ;;  %v591_v55 = vmul.f32 %v2108_v10, %v2340_v48  ;;  %v716_v59 = vmul.f32 %v2110_v11, %v2340_v48  ;;  %v836_v57 = vmul.f32 %v2115_v15, %v2226_v12 }
  0x37   : > { %v1383_v4 = vadd.f32 %v1341_v1, %v1259_v30  ;;  %v844_v49 = vadd.f32 %v828_v5, %v808_v21  ;;  %v877_v50 = vmul.f32 %v2117_v16, %v2348_v39  ;;  %v1001_v60 = vmul.f32 %v2119_v17, %v2348_v39 }
  0x38   : > { %v649_v6 = vrot.slane %v591_v55, 1  ;;  %v774_v46 = vrot.slane %v716_v59, 2  ;;  %v1120_v62 = vmul.f32 %v2121_v18, %v2230_v14  ;;  %v1161_v20 = vmul.f32 %v2131_v24, %v2350_v34 }
  0x39   : > { %1400 = vst.msk [vmem:[#allocation2 + $0x40] sm:$0xff] %vm1391_vm3, %v1383_v4  ;;  %v968_v23 = vadd.f32 %v915_v22, %v844_v49  ;;  %v934_v1 = vrot.slane %v877_v50, 1  ;;  %v1058_v5 = vrot.slane %v1001_v60, 2  ;;  %v1285_v33 = vmul.f32 %v2133_v25, %v2350_v34 }
  0x3a   : > { %v3165_v43 = vrot.slane %v2247_v31, 1  ;;  %v3166_v52 = vrot.slane %v2253_v35, 2  ;;  %v1218_v61 = vrot.slane %v1161_v20, 1  ;;  %v2386_v38 = vmax.f32 %v483_v56, 0.0 }
  0x3b   : > { %v1092_v36 = vadd.f32 %v1039_v32, %v968_v23  ;;  %v3167_v22 = vrot.slane %v2261_v41, 1  ;;  %v3168_v30 = vrot.slane %v2270_v53, 2  ;;  %v3169_v21 = vrot.slane %v2289_v8, 1 }
  0x3c   : > { %v650_v47 = vsel %vm625_vm1, %v3165_v43, %v649_v6  ;;  %v775_v54 = vsel %vm750_vm2, %v3166_v52, %v774_v46  ;;  %v1342_v55 = vrot.slane %v1285_v33, 2  ;;  %v2397_v59 = vmax.f32 %v484_v63, 0.0 }
  0x3d   : > { %v691_v0 = vadd.f32 %v650_v47, %v550_v44  ;;  %v935_v42 = vsel %vm625_vm1, %v3167_v22, %v934_v1  ;;  %v1059_v31 = vsel %vm750_vm2, %v3168_v30, %v1058_v5  ;;  %v1219_v35 = vsel %vm625_vm1, %v3169_v21, %v1218_v61  ;;  %v495_v22 = vld [vmem:[%s2104_s21 + $0xa8] sm:$0xff] }
  0x3e   : > { %v543_v32 = vmul.f32 %v2106_v9, %v2135_v26  ;;  %v1128_v44 = vadd.f32 %v1112_v40, %v1092_v36  ;;  %v580_v41 = vmul.f32 %v2108_v10, %v2135_v26  ;;  %v2405_v53 = vmul.f32 %v2108_v10, %v2137_v27 }
  0x3f   : > { %v816_v4 = vadd.f32 %v775_v54, %v691_v0  ;;  %v3170_v8 = vrot.slane %v2300_v19, 2  ;;  %v705_v50 = vmul.f32 %v2110_v11, %v2135_v26  ;;  %v2414_v60 = vmul.f32 %v2110_v11, %v2137_v27 }
  0x40   : > { %v829_v40 = vmul.f32 %v2115_v15, %v2139_v28  ;;  %v1252_v56 = vadd.f32 %v1199_v37, %v1128_v44  ;;  %v631_v46 = vrot.slane %v580_v41, 1  ;;  %v632_v20 = vrot.slane %v2405_v53, 1  ;;  %v1416_v19 = vld [vmem:[#allocation2 + $0x40] sm:$0xff]  ;;  %v496_v41 = vld [vmem:[%s2104_s21 + $0xb0] sm:$0xff] }
  0x41   : > { %v1343_v49 = vsel %vm750_vm2, %v3170_v8, %v1342_v55  ;;  %v852_v6 = vadd.f32 %v836_v57, %v816_v4  ;;  %v756_v23 = vrot.slane %v705_v50, 2  ;;  %v757_v1 = vrot.slane %v2414_v60, 2  ;;  %1912 = vmatprep.mubr.msk.f32.mxu1 %vm1391_vm3, %v1416_v19 }
  0x42   : > { %v866_v26 = vmul.f32 %v2117_v16, %v2139_v28  ;;  %v2426_v5 = vmul.f32 %v2117_v16, %v2141_v29  ;;  %v1376_v37 = vadd.f32 %v1323_v45, %v1252_v56  ;;  %v633_v33 = vsel %vm625_vm1, %v631_v46, %v632_v20 }
  0x43   : > { %v976_v57 = vadd.f32 %v935_v42, %v852_v6  ;;  %v990_v63 = vmul.f32 %v2119_v17, %v2139_v28  ;;  %v684_v43 = vadd.f32 %v633_v33, %v543_v32  ;;  %v758_v47 = vsel %vm750_vm2, %v756_v23, %v757_v1 }
  0x44   : > { %v916_v52 = vrot.slane %v866_v26, 1  ;;  %v917_v54 = vrot.slane %v2426_v5, 1  ;;  %1393 = vst.msk [vmem:[#allocation2 + $0x8] sm:$0xff] %vm1391_vm3, %v1376_v37  ;;  %v2442_v61 = vmul.f32 %v2119_v17, %v2141_v29  ;;  %v1113_v0 = vmul.f32 %v2121_v18, %v2386_v38 }
  0x45   : > { %v1100_v45 = vadd.f32 %v1059_v31, %v976_v57  ;;  %v1040_v36 = vrot.slane %v990_v63, 2  ;;  %v809_v42 = vadd.f32 %v758_v47, %v684_v43  ;;  %v1150_v21 = vmul.f32 %v2131_v24, %v2386_v38 }
  0x46   : > { %v918_v30 = vsel %vm625_vm1, %v916_v52, %v917_v54  ;;  %v2456_v31 = vmul.f32 %v2131_v24, %v2397_v59  ;;  %v3156_v32 = vrot.slane %v2442_v61, 2  ;;  %v1274_v44 = vmul.f32 %v2133_v25, %v2386_v38 }
  0x47   : > { %v1136_v55 = vadd.f32 %v1120_v62, %v1100_v45  ;;  %v2463_v4 = vmul.f32 %v2133_v25, %v2397_v59  ;;  %v845_v8 = vadd.f32 %v829_v40, %v809_v42  ;;  %v1200_v50 = vrot.slane %v1150_v21, 1 }
  0x48   : > { %v3155_v56 = vrot.slane %v2456_v31, 1  ;;  %v2467_v6 = vmax.f32 %v495_v22, 0.0  ;;  %v1042_v62 = vsel %vm750_vm2, %v1040_v36, %v3156_v32  ;;  %v1324_v19 = vrot.slane %v1274_v44, 2 }
  0x49   : > { %v1260_v46 = vadd.f32 %v1219_v35, %v1136_v55  ;;  %v3154_v23 = vrot.slane %v2463_v4, 2  ;;  %v969_v26 = vadd.f32 %v918_v30, %v845_v8  ;;  %v2476_v57 = vmax.f32 %v496_v41, 0.0 }
  0x4a   : > { %v1202_v37 = vsel %vm625_vm1, %v1200_v50, %v3155_v56  ;;  %v551_v40 = vmul.f32 %v2106_v9, %v2224_v7  ;;  %v592_v63 = vmul.f32 %v2108_v10, %v2224_v7  ;;  %v2487_v43 = vmul.f32 %v2108_v10, %v2226_v12 }
  0x4b   : > { %v1384_v33 = vadd.f32 %v1343_v49, %v1260_v46  ;;  %v1326_v35 = vsel %vm750_vm2, %v1324_v19, %v3154_v23  ;;  %v1409_v47 = vld [vmem:[#allocation2 + $0x8] sm:$0xff]  ;;  %v1093_v52 = vadd.f32 %v1042_v62, %v969_v26  ;;  %v717_v45 = vmul.f32 %v2110_v11, %v2224_v7 }
  0x4c   : > { %v2493_v36 = vmul.f32 %v2110_v11, %v2226_v12  ;;  %v837_v49 = vmul.f32 %v2115_v15, %v2228_v13  ;;  %1901 = vmatmul.mubr.msk.f32.vlgmr.msra.gmra.mxu0 %vm1391_vm3, %v1409_v47  ;;  %v651_v22 = vrot.slane %v592_v63, 1  ;;  %v3150_v42 = vrot.slane %v2487_v43, 1 }
  0x4d   : > { %1401 = vst.msk [vmem:[#allocation2 + $0x48] sm:$0xff] %vm1391_vm3, %v1384_v33  ;;  %v878_v30 = vmul.f32 %v2117_v16, %v2228_v13  ;;  %v2504_v21 = vmul.f32 %v2117_v16, %v2230_v14  ;;  %v1129_v55 = vadd.f32 %v1113_v0, %v1093_v52  ;;  %v776_v44 = vrot.slane %v717_v45, 2 }
  0x4e   : > { %v3153_v41 = vrot.slane %v2493_v36, 2  ;;  %v1002_v8 = vmul.f32 %v2119_v17, %v2228_v13  ;;  %v653_v50 = vsel %vm625_vm1, %v651_v22, %v3150_v42  ;;  %v2515_v19 = vmul.f32 %v2119_v17, %v2230_v14  ;;  %v485_v22 = vld [vmem:[%s2104_s21 + $0x58] sm:$0x3] }
  0x4f   : > { %v936_v46 = vrot.slane %v878_v30, 1  ;;  %v3152_v62 = vrot.slane %v2504_v21, 1  ;;  %v1253_v26 = vadd.f32 %v1202_v37, %v1129_v55  ;;  %v692_v33 = vadd.f32 %v653_v50, %v551_v40 }
  0x50   : > { %v778_v0 = vsel %vm750_vm2, %v776_v44, %v3153_v41  ;;  %v1060_v63 = vrot.slane %v1002_v8, 2  ;;  %v3151_v52 = vrot.slane %v2515_v19, 2  ;;  %v1162_v45 = vmul.f32 %v2131_v24, %v2467_v6 }
  0x51   : > { %v938_v47 = vsel %vm625_vm1, %v936_v46, %v3152_v62  ;;  %v1377_v30 = vadd.f32 %v1326_v35, %v1253_v26  ;;  %v817_v42 = vadd.f32 %v778_v0, %v692_v33  ;;  %v2529_v37 = vmul.f32 %v2131_v24, %v2476_v57 }
  0x52   : > { %v1286_v40 = vmul.f32 %v2133_v25, %v2467_v6  ;;  %v1062_v55 = vsel %vm750_vm2, %v1060_v63, %v3151_v52  ;;  %v1121_v44 = vmul.f32 %v2121_v18, %v2467_v6  ;;  %v1220_v8 = vrot.slane %v1162_v45, 1 }
  0x53   : > { %v2540_v50 = vmul.f32 %v2133_v25, %v2476_v57  ;;  %1394 = vst.msk [vmem:[#allocation2 + $0x10] sm:$0xff] %vm1391_vm3, %v1377_v30  ;;  %v853_v46 = vadd.f32 %v837_v49, %v817_v42  ;;  %v1221_v26 = vrot.slane %v2529_v37, 1  ;;  %v2544_v0 = vmax.f32 %v485_v22, 0.0 }
  0x54   : > { %v1417_v35 = vld [vmem:[#allocation2 + $0x48] sm:$0xff]  ;;  %v1344_v33 = vrot.slane %v1286_v40, 2  ;;  %v544_v45 = vmul.f32 %v2106_v9, %v2137_v27  ;;  %v582_v52 = vmul.f32 %v2108_v10, %v2304_v51  ;;  %v707_v30 = vmul.f32 %v2110_v11, %v2304_v51 }
  0x55   : > { %1913 = vmatmul.mubr.msk.f32.vlgmr.msra.gmra.mxu1 %vm1391_vm3, %v1417_v35  ;;  %v1345_v63 = vrot.slane %v2540_v50, 2  ;;  %v977_v49 = vadd.f32 %v938_v47, %v853_v46  ;;  %v830_v42 = vmul.f32 %v2115_v15, %v2141_v29  ;;  %v868_v22 = vmul.f32 %v2117_v16, %v2306_v58  ;;  %v497_v47 = vld [vmem:[%s2104_s21 + $0xb8] sm:$0x3]  ;;  %s1848_s21 = sshll.u32 %s2447_s13, 3 }
  0x56   : > { %v992_v40 = vmul.f32 %v2119_v17, %v2306_v58  ;;  %v1222_v27 = vsel %vm625_vm1, %v1220_v8, %v1221_v26  ;;  %v634_v62 = vrot.slane %v582_v52, 1  ;;  %v759_v51 = vrot.slane %v707_v30, 2  ;;  %s3088_s11 = scalar_lea.vmem %s3143_s6, %s1848_s21 }
  0x57   : > { %v1346_v35 = vsel %vm750_vm2, %v1344_v33, %v1345_v63  ;;  %v1101_v46 = vadd.f32 %v1062_v55, %v977_v49  ;;  %v919_v41 = vrot.slane %v868_v22, 1  ;;  %v1152_v56 = vmul.f32 %v2131_v24, %v2544_v0 }
  0x58   : > { %v1043_v23 = vrot.slane %v992_v40, 2  ;;  %v635_v32 = vsel %vm625_vm1, %v632_v20, %v634_v62  ;;  %v760_v8 = vsel %vm750_vm2, %v757_v1, %v759_v51  ;;  %v1114_v33 = vmul.f32 %v2121_v18, %v2397_v59 }
  0x59   : > { %v1276_v52 = vmul.f32 %v2133_v25, %v2544_v0  ;;  %v1137_v55 = vadd.f32 %v1121_v44, %v1101_v46  ;;  %v685_v30 = vadd.f32 %v635_v32, %v544_v45  ;;  %v920_v49 = vsel %vm625_vm1, %v917_v54, %v919_v41 }
  0x5a   : > { %v2582_v22 = vmax.f32 %v497_v47, 0.0  ;;  %v1410_v53 = vld [vmem:[#allocation2 + $0x10] sm:$0xff]  ;;  %v3171_v20 = vrot.slane %v2442_v61, 2  ;;  %v1203_v1 = vrot.slane %v1152_v56, 1  ;;  %v594_v40 = vmul.f32 %v2108_v10, %v2348_v39 }
  0x5b   : > { %v1327_v62 = vrot.slane %v1276_v52, 2  ;;  %1903 = vmatprep.mubr.msk.f32.mxu0 %vm1391_vm3, %v1410_v53  ;;  %v1261_v44 = vadd.f32 %v1222_v27, %v1137_v55  ;;  %v810_v32 = vadd.f32 %v760_v8, %v685_v30  ;;  %v552_v5 = vmul.f32 %v2106_v9, %v2226_v12 }
  0x5c   : > { %v1044_v60 = vsel %vm750_vm2, %v3171_v20, %v1043_v23  ;;  %v719_v54 = vmul.f32 %v2110_v11, %v2348_v39  ;;  %v3172_v41 = vrot.slane %v2456_v31, 1  ;;  %v654_v23 = vrot.slane %v594_v40, 1 }
  0x5d   : > { %v838_v56 = vmul.f32 %v2115_v15, %v2230_v14  ;;  %v880_v45 = vmul.f32 %v2117_v16, %v2350_v34  ;;  %v1385_v51 = vadd.f32 %v1346_v35, %v1261_v44  ;;  %v846_v27 = vadd.f32 %v830_v42, %v810_v32 }
  0x5e   : > { %v1204_v61 = vsel %vm625_vm1, %v3172_v41, %v1203_v1  ;;  %v779_v47 = vrot.slane %v719_v54, 2  ;;  %v1004_v46 = vmul.f32 %v2119_v17, %v2350_v34  ;;  %v3173_v8 = vrot.slane %v2463_v4, 2 }
  0x5f   : > { %v3174_v31 = vrot.slane %v2487_v43, 1  ;;  %v939_v30 = vrot.slane %v880_v45, 1  ;;  %v1164_v53 = vmul.f32 %v2131_v24, %v2582_v22  ;;  %1402 = vst.msk [vmem:[#allocation2 + $0x50] sm:$0xff] %vm1391_vm3, %v1385_v51  ;;  %v970_v35 = vadd.f32 %v920_v49, %v846_v27 }
  0x60   : > { %v1328_v52 = vsel %vm750_vm2, %v3173_v8, %v1327_v62  ;;  %v3175_v20 = vrot.slane %v2493_v36, 2  ;;  %v1063_v40 = vrot.slane %v1004_v46, 2  ;;  %v3176_v4 = vrot.slane %v2504_v21, 1 }
  0x61   : > { %v655_v55 = vsel %vm625_vm1, %v3174_v31, %v654_v23  ;;  %v1122_v43 = vmul.f32 %v2121_v18, %v2476_v57  ;;  %v1223_v44 = vrot.slane %v1164_v53, 1  ;;  %v1288_v32 = vmul.f32 %v2133_v25, %v2582_v22 }
  0x62   : > { %v693_v42 = vadd.f32 %v655_v55, %v552_v5  ;;  %v780_v1 = vsel %vm750_vm2, %v3175_v20, %v779_v47  ;;  %v940_v62 = vsel %vm625_vm1, %v3176_v4, %v939_v30  ;;  %v1094_v54 = vadd.f32 %v1044_v60, %v970_v35 }
  0x63   : > { %v545_v36 = vmul.f32 %v2106_v9, %v2139_v28  ;;  %v583_v5 = vmul.f32 %v2108_v10, %v2139_v28  ;;  %v3177_v21 = vrot.slane %v2515_v19, 2  ;;  %v1224_v23 = vsel %vm625_vm1, %v1221_v26, %v1223_v44 }
  0x64   : > { %v818_v49 = vadd.f32 %v780_v1, %v693_v42  ;;  %v2634_v45 = vmul.f32 %v2108_v10, %v2141_v29  ;;  %v708_v60 = vmul.f32 %v2110_v11, %v2139_v28  ;;  %v1130_v51 = vadd.f32 %v1114_v33, %v1094_v54 }
  0x65   : > { %v1064_v41 = vsel %vm750_vm2, %v3177_v21, %v1063_v40  ;;  %v636_v47 = vrot.slane %v583_v5, 1  ;;  %v2640_v46 = vmul.f32 %v2110_v11, %v2141_v29  ;;  %v1347_v19 = vrot.slane %v1288_v32, 2  ;;  %v498_v5 = vld [vmem:[%s2665_s16] sm:$0xff] }
  0x66   : > { %v854_v27 = vadd.f32 %v838_v56, %v818_v49  ;;  %v637_v37 = vrot.slane %v2634_v45, 1  ;;  %v761_v8 = vrot.slane %v708_v60, 2  ;;  %v831_v26 = vmul.f32 %v2115_v15, %v2386_v38  ;;  %v1418_v33 = vld [vmem:[#allocation2 + $0x50] sm:$0xff] }
  0x67   : > { %v1254_v31 = vadd.f32 %v1204_v61, %v1130_v51  ;;  %v762_v30 = vrot.slane %v2640_v46, 2  ;;  %v869_v28 = vmul.f32 %v2117_v16, %v2386_v38  ;;  %v2654_v53 = vmul.f32 %v2117_v16, %v2397_v59  ;;  %1915 = vmatprep.mubr.msk.f32.mxu1 %vm1391_vm3, %v1418_v33 }
  0x68   : > { %v978_v55 = vadd.f32 %v940_v62, %v854_v27  ;;  %v638_v56 = vsel %vm625_vm1, %v636_v47, %v637_v37  ;;  %v993_v35 = vmul.f32 %v2119_v17, %v2386_v38  ;;  %v2660_v61 = vmul.f32 %v2119_v17, %v2397_v59 }
  0x69   : > { %v1378_v42 = vadd.f32 %v1328_v52, %v1254_v31  ;;  %v686_v1 = vadd.f32 %v638_v56, %v545_v36  ;;  %v763_v40 = vsel %vm750_vm2, %v761_v8, %v762_v30  ;;  %v921_v4 = vrot.slane %v869_v28, 1 }
  0x6a   : > { %v1102_v20 = vadd.f32 %v1064_v41, %v978_v55  ;;  %v922_v62 = vrot.slane %v2654_v53, 1  ;;  %v1045_v44 = vrot.slane %v993_v35, 2  ;;  %v1046_v32 = vrot.slane %v2660_v61, 2 }
  0x6b   : > { %1395 = vst.msk [vmem:[#allocation2 + $0x18] sm:$0xff] %vm1391_vm3, %v1378_v42  ;;  %v1348_v52 = vsel %vm750_vm2, %v1345_v63, %v1347_v19  ;;  %v811_v49 = vadd.f32 %v763_v40, %v686_v1  ;;  %v1153_v36 = vmul.f32 %v2131_v24, %v2218_v2  ;;  %v1115_v41 = vmul.f32 %v2121_v18, %v2218_v2  ;;  %v499_v63 = vld [vmem:[%s2665_s16 + $0x8] sm:$0xff] }
  0x6c   : > { %v1138_v54 = vadd.f32 %v1122_v43, %v1102_v20  ;;  %v923_v21 = vsel %vm625_vm1, %v921_v4, %v922_v62  ;;  %v2687_v60 = vmul.f32 %v2131_v24, %v2220_v3  ;;  %v1277_v50 = vmul.f32 %v2133_v25, %v2218_v2 }
  0x6d   : > { %v847_v51 = vadd.f32 %v831_v26, %v811_v49  ;;  %v1205_v27 = vrot.slane %v1153_v36, 1  ;;  %v2694_v47 = vmul.f32 %v2133_v25, %v2220_v3  ;;  %v1047_v19 = vsel %vm750_vm2, %v1045_v44, %v1046_v32 }
  0x6e   : > { %v1262_v43 = vadd.f32 %v1224_v23, %v1138_v54  ;;  %v1206_v8 = vrot.slane %v2687_v60, 1  ;;  %v1329_v31 = vrot.slane %v1277_v50, 2  ;;  %v2700_v55 = vmax.f32 %v498_v5, 0.0 }
  0x6f   : > { %v971_v33 = vadd.f32 %v923_v21, %v847_v51  ;;  %v3163_v56 = vrot.slane %v2694_v47, 2  ;;  %v2703_v23 = vmax.f32 %v499_v63, 0.0  ;;  %v553_v26 = vmul.f32 %v2106_v9, %v2228_v13 }
  0x70   : > { %v1386_v28 = vadd.f32 %v1348_v52, %v1262_v43  ;;  %v595_v35 = vmul.f32 %v2108_v10, %v2228_v13  ;;  %v2711_v42 = vmul.f32 %v2108_v10, %v2230_v14  ;;  %v720_v20 = vmul.f32 %v2110_v11, %v2228_v13 }
  0x71   : > { %v1095_v1 = vadd.f32 %v1047_v19, %v971_v33  ;;  %v1207_v40 = vsel %vm625_vm1, %v1205_v27, %v1206_v8  ;;  %v1331_v4 = vsel %vm750_vm2, %v1329_v31, %v3163_v56  ;;  %v2724_v44 = vmul.f32 %v2110_v11, %v2230_v14 }
  0x72   : > { %1403 = vst.msk [vmem:[#allocation2 + $0x58] sm:$0xff] %vm1391_vm3, %v1386_v28  ;;  %v1411_v54 = vld [vmem:[#allocation2 + $0x18] sm:$0xff]  ;;  %v656_v52 = vrot.slane %v595_v35, 1  ;;  %v3161_v49 = vrot.slane %v2711_v42, 1  ;;  %v781_v13 = vrot.slane %v720_v20, 2  ;;  %v881_v36 = vmul.f32 %v2117_v16, %v2467_v6 }
  0x73   : > { %1904 = vmatmul.mubr.msk.f32.gmra.mxu0 %vm1391_vm3, %v1411_v54  ;;  %v1131_v5 = vadd.f32 %v1115_v41, %v1095_v1  ;;  %v3157_v21 = vrot.slane %v2724_v44, 2  ;;  %v2733_v50 = vmul.f32 %v2117_v16, %v2476_v57  ;;  %v1005_v63 = vmul.f32 %v2119_v17, %v2467_v6 }
  0x74   : > { %v658_v43 = vsel %vm625_vm1, %v656_v52, %v3161_v49  ;;  %v839_v51 = vmul.f32 %v2115_v15, %v2467_v6  ;;  %v941_v27 = vrot.slane %v881_v36, 1  ;;  %v2744_v41 = vmul.f32 %v2119_v17, %v2476_v57 }
  0x75   : > { %v1255_v19 = vadd.f32 %v1207_v40, %v1131_v5  ;;  %v694_v31 = vadd.f32 %v658_v43, %v553_v26  ;;  %v783_v28 = vsel %vm750_vm2, %v781_v13, %v3157_v21  ;;  %v3160_v33 = vrot.slane %v2733_v50, 1 }
  0x76   : > { %v1065_v35 = vrot.slane %v1005_v63, 2  ;;  %v3159_v20 = vrot.slane %v2744_v41, 2  ;;  %v1165_v1 = vmul.f32 %v2131_v24, %v2700_v55  ;;  %v2755_v54 = vmul.f32 %v2131_v24, %v2703_v23 }
  0x77   : > { %v1379_v52 = vadd.f32 %v1331_v4, %v1255_v19  ;;  %v819_v36 = vadd.f32 %v783_v28, %v694_v31  ;;  %v1123_v26 = vmul.f32 %v2121_v18, %v2700_v55  ;;  %v1289_v40 = vmul.f32 %v2133_v25, %v2700_v55 }
  0x78   : > { %v943_v5 = vsel %vm625_vm1, %v941_v27, %v3160_v33  ;;  %v1225_v63 = vrot.slane %v1165_v1, 1  ;;  %v3158_v43 = vrot.slane %v2755_v54, 1  ;;  %v2767_v21 = vmul.f32 %v2133_v25, %v2703_v23  ;;  %v500_v33 = vld [vmem:[%s2665_s16 + $0x10] sm:$0x3] }
  0x79   : > { %v1419_v13 = vld [vmem:[#allocation2 + $0x58] sm:$0xff]  ;;  %1396 = vst.msk [vmem:[#allocation2 + $0x20] sm:$0xff] %vm1391_vm3, %v1379_v52  ;;  %v855_v4 = vadd.f32 %v839_v51, %v819_v36  ;;  %v1067_v19 = vsel %vm750_vm2, %v1065_v35, %v3159_v20  ;;  %v1349_v31 = vrot.slane %v1289_v40, 2  ;;  %v585_v27 = vmul.f32 %v2108_v10, %v2306_v58 }
  0x7a   : > { %1916 = vmatmul.mubr.msk.f32.gmra.mxu1 %vm1391_vm3, %v1419_v13  ;;  %v1227_v28 = vsel %vm625_vm1, %v1225_v63, %v3158_v43  ;;  %v3162_v1 = vrot.slane %v2767_v21, 2  ;;  %v546_v13 = vmul.f32 %v2106_v9, %v2141_v29  ;;  %v710_v51 = vmul.f32 %v2110_v11, %v2306_v58 }
  0x7b   : > { %v979_v52 = vadd.f32 %v943_v5, %v855_v4  ;;  %v639_v36 = vrot.slane %v585_v27, 1  ;;  %v871_v35 = vmul.f32 %v2117_v16, %v2544_v0  ;;  %v995_v40 = vmul.f32 %v2119_v17, %v2544_v0 }
  0x7c   : > { %v1351_v63 = vsel %vm750_vm2, %v1349_v31, %v3162_v1  ;;  %v764_v43 = vrot.slane %v710_v51, 2  ;;  %v832_v20 = vmul.f32 %v2115_v15, %v2397_v59  ;;  %v1155_v29 = vmul.f32 %v2131_v24, %v2340_v48 }
  0x7d   : > { %v1103_v58 = vadd.f32 %v1067_v19, %v979_v52  ;;  %v640_v5 = vsel %vm625_vm1, %v637_v37, %v639_v36  ;;  %v924_v4 = vrot.slane %v871_v35, 1  ;;  %v1048_v27 = vrot.slane %v995_v40, 2 }
  0x7e   : > { %v687_v49 = vadd.f32 %v640_v5, %v546_v13  ;;  %v765_v31 = vsel %vm750_vm2, %v762_v30, %v764_v43  ;;  %v1208_v51 = vrot.slane %v1155_v29, 1  ;;  %v1279_v1 = vmul.f32 %v2133_v25, %v2340_v48 }
  0x7f   : > { %v1139_v56 = vadd.f32 %v1123_v26, %v1103_v58  ;;  %v925_v19 = vsel %vm625_vm1, %v922_v62, %v924_v4  ;;  %v1049_v45 = vsel %vm750_vm2, %v1046_v32, %v1048_v27  ;;  %v1116_v37 = vmul.f32 %v2121_v18, %v2220_v3 }
  0x80   : > { %v1412_v13 = vld [vmem:[#allocation2 + $0x20] sm:$0xff]  ;;  %v812_v46 = vadd.f32 %v765_v31, %v687_v49  ;;  %v1209_v30 = vsel %vm625_vm1, %v1206_v8, %v1208_v51  ;;  %v1332_v43 = vrot.slane %v1279_v1, 2  ;;  %v2815_v52 = vmax.f32 %v500_v33, 0.0 }
  0x81   : > { %1906 = vmatprep.mubr.msk.f32.mxu0 %vm1391_vm3, %v1412_v13  ;;  %v1263_v53 = vadd.f32 %v1227_v28, %v1139_v56  ;;  %v554_v61 = vmul.f32 %v2106_v9, %v2230_v14  ;;  %v597_v62 = vmul.f32 %v2108_v10, %v2350_v34  ;;  %v722_v32 = vmul.f32 %v2110_v11, %v2350_v34 }
  0x82   : > { %v848_v49 = vadd.f32 %v832_v20, %v812_v46  ;;  %v840_v60 = vmul.f32 %v2115_v15, %v2476_v57  ;;  %v883_v8 = vmul.f32 %v2117_v16, %v2582_v22  ;;  %v1007_v33 = vmul.f32 %v2119_v17, %v2582_v22 }
  0x83   : > { %v1387_v56 = vadd.f32 %v1351_v63, %v1263_v53  ;;  %v3178_v26 = vrot.slane %v2694_v47, 2  ;;  %v659_v28 = vrot.slane %v597_v62, 1  ;;  %v784_v1 = vrot.slane %v722_v32, 2 }
  0x84   : > { %v972_v36 = vadd.f32 %v925_v19, %v848_v49  ;;  %v944_v35 = vrot.slane %v883_v8, 1  ;;  %v1068_v34 = vrot.slane %v1007_v33, 2  ;;  %v1167_v20 = vmul.f32 %v2131_v24, %v2815_v52 }
  0x85   : > { %v1333_v14 = vsel %vm750_vm2, %v3178_v26, %v1332_v43  ;;  %1404 = vst.msk [vmem:[#allocation2 + $0x60] sm:$0xff] %vm1391_vm3, %v1387_v56  ;;  %v3179_v40 = vrot.slane %v2711_v42, 1  ;;  %v3180_v63 = vrot.slane %v2724_v44, 2  ;;  %v1124_v58 = vmul.f32 %v2121_v18, %v2703_v23 }
  0x86   : > { %v1291_v5 = vmul.f32 %v2133_v25, %v2815_v52  ;;  %v1096_v4 = vadd.f32 %v1049_v45, %v972_v36  ;;  %v3181_v31 = vrot.slane %v2733_v50, 1  ;;  %v547_v42 = vmul.f32 %v2106_v9, %v2386_v38 }
  0x87   : > { %v660_v29 = vsel %vm625_vm1, %v3179_v40, %v659_v28  ;;  %v785_v47 = vsel %vm750_vm2, %v3180_v63, %v784_v1  ;;  %v3182_v44 = vrot.slane %v2744_v41, 2  ;;  %v1228_v13 = vrot.slane %v1167_v20, 1 }
  0x88   : > { %v695_v27 = vadd.f32 %v660_v29, %v554_v61  ;;  %v945_v51 = vsel %vm625_vm1, %v3181_v31, %v944_v35  ;;  %v586_v46 = vmul.f32 %v2108_v10, %v2386_v38  ;;  %v2858_v45 = vmul.f32 %v2108_v10, %v2397_v59 }
  0x89   : > { %v1069_v19 = vsel %vm750_vm2, %v3182_v44, %v1068_v34  ;;  %v1132_v43 = vadd.f32 %v1116_v37, %v1096_v4  ;;  %v711_v50 = vmul.f32 %v2110_v11, %v2386_v38  ;;  %v2864_v61 = vmul.f32 %v2110_v11, %v2397_v59  ;;  %v501_v44 = vld [vmem:[%s2889_s20] sm:$0xff] }
  0x8a   : > { %v820_v53 = vadd.f32 %v785_v47, %v695_v27  ;;  %v3183_v41 = vrot.slane %v2755_v54, 1  ;;  %v1352_v32 = vrot.slane %v1291_v5, 2  ;;  %v641_v49 = vrot.slane %v586_v46, 1 }
  0x8b   : > { %v642_v8 = vrot.slane %v2858_v45, 1  ;;  %v1256_v33 = vadd.f32 %v1209_v30, %v1132_v43  ;;  %v766_v37 = vrot.slane %v711_v50, 2  ;;  %v767_v26 = vrot.slane %v2864_v61, 2  ;;  %v502_v43 = vld [vmem:[%s2889_s20 + $0x8] sm:$0xff] }
  0x8c   : > { %v1229_v62 = vsel %vm625_vm1, %v3183_v41, %v1228_v13  ;;  %v856_v56 = vadd.f32 %v840_v60, %v820_v53  ;;  %v833_v28 = vmul.f32 %v2115_v15, %v2218_v2  ;;  %v872_v54 = vmul.f32 %v2117_v16, %v2218_v2  ;;  %v1420_v36 = vld [vmem:[#allocation2 + $0x60] sm:$0xff] }
  0x8d   : > { %v643_v38 = vsel %vm625_vm1, %v641_v49, %v642_v8  ;;  %v2881_v1 = vmul.f32 %v2117_v16, %v2220_v3  ;;  %v1380_v30 = vadd.f32 %v1333_v14, %v1256_v33  ;;  %v768_v34 = vsel %vm750_vm2, %v766_v37, %v767_v26  ;;  %1918 = vmatprep.mubr.msk.f32.mxu1 %vm1391_vm3, %v1420_v36 }
  0x8e   : > { %v980_v60 = vadd.f32 %v945_v51, %v856_v56  ;;  %v688_v35 = vadd.f32 %v643_v38, %v547_v42  ;;  %v926_v20 = vrot.slane %v872_v54, 1  ;;  %v996_v14 = vmul.f32 %v2119_v17, %v2218_v2 }
  0x8f   : > { %v927_v40 = vrot.slane %v2881_v1, 1  ;;  %v2897_v29 = vmul.f32 %v2119_v17, %v2220_v3  ;;  %1397 = vst.msk [vmem:[#allocation2 + $0x28] sm:$0xff] %vm1391_vm3, %v1380_v30  ;;  %v3184_v47 = vrot.slane %v2767_v21, 2  ;;  %v1156_v27 = vmul.f32 %v2131_v24, %v2224_v7 }
  0x90   : > { %v1104_v63 = vadd.f32 %v1069_v19, %v980_v60  ;;  %v813_v4 = vadd.f32 %v768_v34, %v688_v35  ;;  %v1050_v31 = vrot.slane %v996_v14, 2  ;;  %v2911_v42 = vmul.f32 %v2131_v24, %v2226_v12 }
  0x91   : > { %v1353_v5 = vsel %vm750_vm2, %v3184_v47, %v1352_v32  ;;  %v928_v2 = vsel %vm625_vm1, %v926_v20, %v927_v40  ;;  %v1051_v51 = vrot.slane %v2897_v29, 2  ;;  %v1210_v13 = vrot.slane %v1156_v27, 1 }
  0x92   : > { %v1140_v19 = vadd.f32 %v1124_v58, %v1104_v63  ;;  %v849_v21 = vadd.f32 %v833_v28, %v813_v4  ;;  %v1280_v46 = vmul.f32 %v2133_v25, %v2224_v7  ;;  %v1117_v50 = vmul.f32 %v2121_v18, %v2224_v7 }
  0x93   : > { %v1052_v53 = vsel %vm750_vm2, %v1050_v31, %v1051_v51  ;;  %v1211_v41 = vrot.slane %v2911_v42, 1  ;;  %v2925_v32 = vmul.f32 %v2133_v25, %v2226_v12  ;;  %v531_v56 = vmax.f32 %v501_v44, 0.0 }
  0x94   : > { %v1264_v58 = vadd.f32 %v1229_v62, %v1140_v19  ;;  %v973_v49 = vadd.f32 %v928_v2, %v849_v21  ;;  %v1334_v33 = vrot.slane %v1280_v46, 2  ;;  %v2931_v28 = vmax.f32 %v502_v43, 0.0 }
  0x95   : > { %v1212_v37 = vsel %vm625_vm1, %v1210_v13, %v1211_v41  ;;  %v1335_v38 = vrot.slane %v2925_v32, 2  ;;  %v598_v7 = vmul.f32 %v2108_v10, %v2467_v6  ;;  %v2937_v30 = vmul.f32 %v2108_v10, %v2476_v57 }
  0x96   : > { %v1388_v54 = vadd.f32 %v1353_v5, %v1264_v58  ;;  %v1097_v36 = vadd.f32 %v1052_v53, %v973_v49  ;;  %v723_v62 = vmul.f32 %v2110_v11, %v2467_v6  ;;  %v1413_v60 = vld [vmem:[#allocation2 + $0x28] sm:$0xff]  ;;  %v555_v34 = vmul.f32 %v2106_v9, %v2467_v6 }
  0x97   : > { %v1336_v35 = vsel %vm750_vm2, %v1334_v33, %v1335_v38  ;;  %v661_v20 = vrot.slane %v598_v7, 1  ;;  %v2948_v14 = vmul.f32 %v2110_v11, %v2476_v57  ;;  %1907 = vmatmul.mubr.msk.f32.gmra.mxu0 %vm1391_vm3, %v1413_v60  ;;  %v662_v47 = vrot.slane %v2937_v30, 1 }
  0x98   : > { %1405 = vst.msk [vmem:[#allocation2 + $0x68] sm:$0xff] %vm1391_vm3, %v1388_v54  ;;  %v1133_v63 = vadd.f32 %v1117_v50, %v1097_v36  ;;  %v786_v5 = vrot.slane %v723_v62, 2  ;;  %v884_v4 = vmul.f32 %v2117_v16, %v2700_v55  ;;  %v2958_v6 = vmul.f32 %v2117_v16, %v2703_v23 }
  0x99   : > { %v787_v27 = vrot.slane %v2948_v14, 2  ;;  %v1008_v2 = vmul.f32 %v2119_v17, %v2700_v55  ;;  %v2964_v31 = vmul.f32 %v2119_v17, %v2703_v23  ;;  %v663_v19 = vsel %vm625_vm1, %v661_v20, %v662_v47 }
  0x9a   : > { %v1257_v44 = vadd.f32 %v1212_v37, %v1133_v63  ;;  %v841_v21 = vmul.f32 %v2115_v15, %v2700_v55  ;;  %v946_v13 = vrot.slane %v884_v4, 1  ;;  %v696_v46 = vadd.f32 %v663_v19, %v555_v34 }
  0x9b   : > { %v788_v43 = vsel %vm750_vm2, %v786_v5, %v787_v27  ;;  %v947_v53 = vrot.slane %v2958_v6, 1  ;;  %v1070_v50 = vrot.slane %v1008_v2, 2  ;;  %v1071_v49 = vrot.slane %v2964_v31, 2 }
  0x9c   : > { %v1381_v58 = vadd.f32 %v1336_v35, %v1257_v44  ;;  %v1168_v33 = vmul.f32 %v2131_v24, %v531_v56  ;;  %v2979_v37 = vmul.f32 %v2131_v24, %v2931_v28  ;;  %v821_v7 = vadd.f32 %v788_v43, %v696_v46 }
  0x9d   : > { %v1292_v55 = vmul.f32 %v2133_v25, %v531_v56  ;;  %v2984_v54 = vmul.f32 %v2133_v25, %v2931_v28  ;;  %v948_v36 = vsel %vm625_vm1, %v946_v13, %v947_v53  ;;  %v1072_v62 = vsel %vm750_vm2, %v1070_v50, %v1071_v49 }
  0x9e   : > { %1398 = vst.msk [vmem:[#allocation2 + $0x30] sm:$0xff] %vm1391_vm3, %v1381_v58  ;;  %v1125_v60 = vmul.f32 %v2121_v18, %v531_v56  ;;  %v857_v34 = vadd.f32 %v841_v21, %v821_v7  ;;  %v1230_v20 = vrot.slane %v1168_v33, 1  ;;  %v1231_v63 = vrot.slane %v2979_v37, 1  ;;  %v1849_v37 = vld [vmem:[%s3142_s5] ss:$0 sm:$0xff] }
  0x9f   : > { %v1421_v35 = vld [vmem:[#allocation2 + $0x68] sm:$0xff]  ;;  %v588_v5 = vmul.f32 %v2108_v10, %v2544_v0  ;;  %v1354_v4 = vrot.slane %v1292_v55, 2  ;;  %v548_v2 = vmul.f32 %v2106_v9, %v2397_v59  ;;  %v713_v44 = vmul.f32 %v2110_v11, %v2544_v0 }
  0xa0   : > { %1919 = vmatmul.mubr.msk.f32.gmra.mxu1 %vm1391_vm3, %v1421_v35  ;;  %v874_v56 = vmul.f32 %v2117_v16, %v2340_v48  ;;  %v981_v19 = vadd.f32 %v948_v36, %v857_v34  ;;  %v1355_v21 = vrot.slane %v2984_v54, 2  ;;  %v998_v46 = vmul.f32 %v2119_v17, %v2340_v48  ;;  %v503_v48 = vld [vmem:[%s2889_s20 + $0x10] sm:$0x3] }
  0xa1   : > { %v644_v13 = vrot.slane %v588_v5, 1  ;;  %v769_v43 = vrot.slane %v713_v44, 2  ;;  %v1232_v0 = vsel %vm625_vm1, %v1230_v20, %v1231_v63  ;;  %v834_v55 = vmul.f32 %v2115_v15, %v2220_v3 }
  0xa2   : > { %v929_v50 = vrot.slane %v874_v56, 1  ;;  %v1105_v58 = vadd.f32 %v1072_v62, %v981_v19  ;;  %v1356_v45 = vsel %vm750_vm2, %v1354_v4, %v1355_v21  ;;  %v1158_v62 = vmul.f32 %v2131_v24, %v2348_v39 }
  0xa3   : > { %v645_v59 = vsel %vm625_vm1, %v642_v8, %v644_v13  ;;  %v770_v7 = vsel %vm750_vm2, %v767_v26, %v769_v43  ;;  %v1053_v8 = vrot.slane %v998_v46, 2  ;;  %v1282_v3 = vmul.f32 %v2133_v25, %v2348_v39 }
  0xa4   : > { %v689_v33 = vadd.f32 %v645_v59, %v548_v2  ;;  %v1141_v35 = vadd.f32 %v1125_v60, %v1105_v58  ;;  %v930_v61 = vsel %vm625_vm1, %v927_v40, %v929_v50  ;;  %v600_v26 = vmul.f32 %v2108_v10, %v2582_v22 }
  0xa5   : > { %v1414_v36 = vld [vmem:[#allocation2 + $0x30] sm:$0xff]  ;;  %v533_v20 = vmax.f32 %v503_v48, 0.0  ;;  %v556_v5 = vmul.f32 %v2106_v9, %v2476_v57  ;;  %v725_v4 = vmul.f32 %v2110_v11, %v2582_v22  ;;  %v886_v1 = vmul.f32 %v2117_v16, %v2815_v52 }
  0xa6   : > { %1909 = vmatprep.mubr.msk.f32.mxu0 %vm1391_vm3, %v1414_v36  ;;  %v814_v34 = vadd.f32 %v770_v7, %v689_v33  ;;  %v1265_v60 = vadd.f32 %v1232_v0, %v1141_v35  ;;  %v664_v44 = vrot.slane %v600_v26, 1  ;;  %v1010_v40 = vmul.f32 %v2119_v17, %v2815_v52 }
  0xa7   : > { %v1054_v10 = vsel %vm750_vm2, %v1051_v51, %v1053_v8  ;;  %v1213_v56 = vrot.slane %v1158_v62, 1  ;;  %v789_v19 = vrot.slane %v725_v4, 2  ;;  %v1118_v9 = vmul.f32 %v2121_v18, %v2226_v12 }
  0xa8   : > { %v850_v2 = vadd.f32 %v834_v55, %v814_v34  ;;  %v1389_v39 = vadd.f32 %v1356_v45, %v1265_v60  ;;  %v665_v11 = vsel %vm625_vm1, %v662_v47, %v664_v44  ;;  %v949_v57 = vrot.slane %v886_v1, 1 }
  0xa9   : > { %v1337_v16 = vrot.slane %v1282_v3, 2  ;;  %v697_v17 = vadd.f32 %v665_v11, %v556_v5  ;;  %v790_v22 = vsel %vm750_vm2, %v787_v27, %v789_v19  ;;  %v842_v52 = vmul.f32 %v2115_v15, %v2703_v23 }
  0xaa   : > { %v974_v13 = vadd.f32 %v930_v61, %v850_v2  ;;  %1406 = vst.msk [vmem:[#allocation2 + $0x70] sm:$0xff] %vm1391_vm3, %v1389_v39  ;;  %v1073_v51 = vrot.slane %v1010_v40, 2  ;;  %v1170_v12 = vmul.f32 %v2131_v24, %v533_v20  ;;  %v1214_v30 = vsel %vm625_vm1, %v1211_v41, %v1213_v56 }
  0xab   : > { %v822_v47 = vadd.f32 %v790_v22, %v697_v17  ;;  %v950_v43 = vsel %vm625_vm1, %v947_v53, %v949_v57  ;;  %v1294_v14 = vmul.f32 %v2133_v25, %v533_v20  ;;  %v1338_v15 = vsel %vm750_vm2, %v1335_v38, %v1337_v16 }
  0xac   : > { %v1098_v29 = vadd.f32 %v1054_v10, %v974_v13  ;;  %v1074_v24 = vsel %vm750_vm2, %v1071_v49, %v1073_v51  ;;  %v1233_v42 = vrot.slane %v1170_v12, 1  ;;  %v1126_v50 = vmul.f32 %v2121_v18, %v2931_v28 }
  0xad   : > { %v858_v23 = vadd.f32 %v842_v52, %v822_v47  ;;  %v1357_v58 = vrot.slane %v1294_v14, 2 }
  0xae   : > { %v1134_v46 = vadd.f32 %v1118_v9, %v1098_v29  ;;  %v1234_v32 = vsel %vm625_vm1, %v1231_v63, %v1233_v42 }
  0xaf   : > { %v982_v41 = vadd.f32 %v950_v43, %v858_v23  ;;  %v1358_v31 = vsel %vm750_vm2, %v1355_v21, %v1357_v58 }
  0xb0   : > { %v1258_v27 = vadd.f32 %v1214_v30, %v1134_v46 }
  0xb1   : > { %v1422_v6 = vld [vmem:[#allocation2 + $0x70] sm:$0xff]  ;;  %v1106_v25 = vadd.f32 %v1074_v24, %v982_v41 }
  0xb2   : > { %v1382_v53 = vadd.f32 %v1338_v15, %v1258_v27  ;;  %1921 = vmatprep.mubr.msk.f32.mxu1 %vm1391_vm3, %v1422_v6 }
  0xb3   : > { %v1142_v38 = vadd.f32 %v1126_v50, %v1106_v25 }
  0xb4   : > { %1399 = vst.msk [vmem:[#allocation2 + $0x38] sm:$0xff] %vm1391_vm3, %v1382_v53 }
  0xb5   : > { %v1266_v49 = vadd.f32 %v1234_v32, %v1142_v38 }
  0xb7   : > { %v1390_v18 = vadd.f32 %v1358_v31, %v1266_v49 }
  0xb9   : > { %1407 = vst.msk [vmem:[#allocation2 + $0x78] sm:$0xff] %vm1391_vm3, %v1390_v18 }
  0xbb   : > { %v1415_v28 = vld [vmem:[#allocation2 + $0x38] sm:$0xff] }
  0xbc   : > { %1910 = vmatmul.mubr.msk.f32.gmra.mxu0 %vm1391_vm3, %v1415_v28 }
  0xc0   : > { %v1423_v59 = vld [vmem:[#allocation2 + $0x78] sm:$0xff] }
  0xc1   : > { %1922 = vmatmul.mubr.msk.f32.gmra.mxu1 %vm1391_vm3, %v1423_v59 }
 0x10c   : > { %v1902_v54 = vpop.f32.mrf.mxu0 }
 0x10d   : > { %v1557_v63 = vadd.f32 %v1902_v54, %v1849_v37 }
 0x10e   : > { %v1551_v21 = vpop.f32.mrf.mxu0 }
 0x10f   : > { %1632 = vst.msk [vmem:[%s3088_s11 + $0x8] sm:$0xff] %vm1630_vm4, %v1557_v63  ;;  %v1552_v0 = vadd.f32 %v1849_v37, %v1551_v21 }
 0x111   : > { %1631 = vst.msk [vmem:[%s3088_s11] sm:$0xff] %vm1630_vm4, %v1552_v0 }
 0x115   : > { %v1914_v33 = vpop.f32.mrf.mxu1 }
 0x116   : > { %v1597_v7 = vadd.f32 %v1914_v33, %v1849_v37 }
 0x117   : > { %v1591_v55 = vpop.f32.mrf.mxu1 }
 0x118   : > { %1640 = vst.msk [vmem:[%s3088_s11 + $0x48] sm:$0xff] %vm1630_vm4, %v1597_v7  ;;  %v1592_v48 = vadd.f32 %v1849_v37, %v1591_v55 }
 0x11a   : > { %1639 = vst.msk [vmem:[%s3088_s11 + $0x40] sm:$0xff] %vm1630_vm4, %v1592_v48 }
 0x133   : > { %v1905_v36 = vpop.f32.mrf.mxu0 }
 0x134   : > { %v1567_v35 = vadd.f32 %v1905_v36, %v1849_v37 }
 0x135   : > { %v1561_v45 = vpop.f32.mrf.mxu0 }
 0x136   : > { %1634 = vst.msk [vmem:[%s3088_s11 + $0x18] sm:$0xff] %vm1630_vm4, %v1567_v35  ;;  %v1562_v8 = vadd.f32 %v1849_v37, %v1561_v45 }
 0x138   : > { %1633 = vst.msk [vmem:[%s3088_s11 + $0x10] sm:$0xff] %vm1630_vm4, %v1562_v8 }
 0x13a   : > { %v1917_v62 = vpop.f32.mrf.mxu1 }
 0x13b   : > { %v1607_v34 = vadd.f32 %v1917_v62, %v1849_v37 }
 0x13c   : > { %v1601_v61 = vpop.f32.mrf.mxu1 }
 0x13d   : > { %1642 = vst.msk [vmem:[%s3088_s11 + $0x58] sm:$0xff] %vm1630_vm4, %v1607_v34  ;;  %v1602_v3 = vadd.f32 %v1849_v37, %v1601_v61 }
 0x13f   : > { %1641 = vst.msk [vmem:[%s3088_s11 + $0x50] sm:$0xff] %vm1630_vm4, %v1602_v3 }
 0x157   : > { %v1908_v26 = vpop.f32.mrf.mxu0 }
 0x158   : > { %v1577_v60 = vadd.f32 %v1908_v26, %v1849_v37 }
 0x159   : > { %v1571_v20 = vpop.f32.mrf.mxu0 }
 0x15a   : > { %1636 = vst.msk [vmem:[%s3088_s11 + $0x28] sm:$0xff] %vm1630_vm4, %v1577_v60  ;;  %v1572_v5 = vadd.f32 %v1849_v37, %v1571_v20 }
 0x15c   : > { %1635 = vst.msk [vmem:[%s3088_s11 + $0x20] sm:$0xff] %vm1630_vm4, %v1572_v5 }
 0x160   : > { %v1920_v4 = vpop.f32.mrf.mxu1 }
 0x161   : > { %v1617_v2 = vadd.f32 %v1920_v4, %v1849_v37 }
 0x162   : > { %v1611_v44 = vpop.f32.mrf.mxu1 }
 0x163   : > { %1644 = vst.msk [vmem:[%s3088_s11 + $0x68] sm:$0xff] %vm1630_vm4, %v1617_v2  ;;  %v1612_v1 = vadd.f32 %v1849_v37, %v1611_v44 }
 0x165   : > { %1643 = vst.msk [vmem:[%s3088_s11 + $0x60] sm:$0xff] %vm1630_vm4, %v1612_v1 }
 0x17c   : > { %v1911_v40 = vpop.f32.mrf.mxu0 }
 0x17d   : > { %v1587_v39 = vadd.f32 %v1911_v40, %v1849_v37 }
 0x17e   : > { %v1581_v10 = vpop.f32.mrf.mxu0 }
 0x17f   : > { %1638 = vst.msk [vmem:[%s3088_s11 + $0x38] sm:$0xff] %vm1630_vm4, %v1587_v39  ;;  %v1582_v56 = vadd.f32 %v1849_v37, %v1581_v10 }
 0x181   : > { %1637 = vst.msk [vmem:[%s3088_s11 + $0x30] sm:$0xff] %vm1630_vm4, %v1582_v56  ;;  %v1923_v19 = vpop.f32.mrf.mxu1 }
 0x182   : > { %v1627_v13 = vadd.f32 %v1923_v19, %v1849_v37 }
 0x183   : > { %v1621_v9 = vpop.f32.mrf.mxu1 }
 0x184   : > { %1646 = vst.msk [vmem:[%s3088_s11 + $0x78] sm:$0xff] %vm1630_vm4, %v1627_v13  ;;  %v1622_v11 = vadd.f32 %v1849_v37, %v1621_v9 }
 0x186   : > { %1645 = vst.msk [vmem:[%s3088_s11 + $0x70] sm:$0xff] %vm1630_vm4, %v1622_v11 }
 0x187 PF: > { %s16_s25 = sadd.s32 1, %s2008_s25   ;;  %s3185_s21 = smov %s2000_s23 }
 0x188   : > { %p13_p10 = scmp.ge.s32.totalorder %s16_s25, 6   ;;  %s3186_s22 = smov %s2004_s24 }
 0x189   : > { %s3187_s23 = smov %s3190_s26  ;;  %s3188_s24 = smov %s3194_s27 }
 0x18a   :  { %15 = sbr.rel (!%p13_p10) target bundleno = 3 (0x3), region = 90 }

</bundles_post_ra>
